<compile_context>
chip_gen: v6e
topology: v6e:2x2x1
jax: 0.10.0
libtpu: 0.0.40
codegen_flags: <defaults>
</compile_context>

<pallas_src>
import functools
import math

import jax
import jax.numpy as jnp
from jax.experimental import pallas as pl
from jax.experimental.pallas import tpu as pltpu


# ----------------------------------------------------------------------------
# Fused per-layer kernel: attention (with relative positions) + highway
# ----------------------------------------------------------------------------
def _fused_layer_kernel(x_ref, wq_ref, wk_ref, wv_ref, wo_ref,
                        bq_ref, bk_ref, bv_ref, bo_ref,
                        rel_ref,
                        whn_ref, bhn_ref, whg_ref, bhg_ref,
                        o_ref, *, num_heads, d_k, n_rel, n_highway,
                        add_residual, seq_len):
    """One (direction, batch-element) grid step.

    x_ref     : (1, 1, S, D)    f32   layer input for this (dir, batch)
    wq/wk/wv  : (1, D, D)       bf16  projections (y = x @ W + b convention)
    wo_ref    : (1, H, d_k, D)  bf16  output projection, rows split per head
    b*_ref    : (1, 1, D)       f32
    rel_ref   : (1, H, P, d_k)  bf16  relative-position embeddings (P = Wa+1)
    wh*_ref   : (1, n_hw, D, D) bf16  highway nonlinear / gate weights
    bh*_ref   : (1, n_hw, 1, D) f32
    o_ref     : (1, 1, S, D)    f32
    """
    H, dk, S = num_heads, d_k, seq_len
    wa = n_rel - 1                               # window Wa = lm_width + 1
    scale = 1.0 / math.sqrt(dk)

    x = x_ref[0, 0]                              # (S, D) f32
    x_b = x.astype(jnp.bfloat16)

    # --- QKV projections: full (S,D)@(D,D) MXU matmuls, bf16 in / f32 acc.
    q = jnp.dot(x_b, wq_ref[0], preferred_element_type=jnp.float32) + bq_ref[0]
    k = jnp.dot(x_b, wk_ref[0], preferred_element_type=jnp.float32) + bk_ref[0]
    v = jnp.dot(x_b, wv_ref[0], preferred_element_type=jnp.float32) + bv_ref[0]
    q = q * scale                                # fold 1/sqrt(d_k) once

    # --- split heads -> (H, S, d_k); heads batched over the leading axis.
    def split_heads(t):
        return jnp.stack([t[:, h * dk:(h + 1) * dk] for h in range(H)], axis=0)

    qh = split_heads(q).astype(jnp.bfloat16)     # (H, S, dk)
    kh = split_heads(k).astype(jnp.bfloat16)
    vh = split_heads(v).astype(jnp.bfloat16)

    # --- content scores, batched over heads on the MXU: (H, S, S)
    scores = jnp.einsum('hqd,hkd->hqk', qh, kh,
                        preferred_element_type=jnp.float32)

    # --- relative-position scores via the skew trick (no (H,S,S,dk) tensor):
    #     rel_raw[h, i, p] = q[h, i] . rel[h, p]
    rel_raw = jnp.einsum('hqd,hpd->hqp', qh, rel_ref[0],
                         preferred_element_type=jnp.float32)   # (H, S, P)

    # In-kernel band index map (no (S,S) int32 input DMA):
    #   forward (dir 0) : off = i - j,  idx = Wa - off,  0 <= off <= Wa
    #   backward (dir 1): off = j - i,  idx = off,       0 <= off <= Wa
    sel_fwd = (pl.program_id(0) == 0).astype(jnp.int32)        # scalar 1/0
    dsign = 2 * sel_fwd - 1                                    # +1 fwd, -1 bwd
    ii = jax.lax.broadcasted_iota(jnp.int32, (S, S), 0)
    jj = jax.lax.broadcasted_iota(jnp.int32, (S, S), 1)
    off = dsign * (ii - jj)                                    # (S, S)
    in_band = (off >= 0) & (off <= wa)
    relidx = sel_fwd * wa + (1 - 2 * sel_fwd) * off            # valid in-band

    for p in range(n_rel):                                     # P is small
        sel = (in_band & (relidx == p))[None, :, :]            # (1, S, S)
        scores = scores + jnp.where(sel, rel_raw[:, :, p:p + 1], 0.0)

    # --- local-window mask + numerically stable softmax (f32, EUP reciprocal)
    scores = jnp.where(in_band[None, :, :], scores, -1e9)
    m = jnp.max(scores, axis=-1, keepdims=True)
    e = jnp.exp(scores - m)
    p_attn = e * pl.reciprocal(jnp.sum(e, axis=-1, keepdims=True), approx=True)

    # --- attention output + output projection (heads batched, then reduced).
    ctx = jnp.einsum('hqk,hkd->hqd', p_attn.astype(jnp.bfloat16), vh,
                     preferred_element_type=jnp.float32)       # (H, S, dk)
    partial = jnp.einsum('hsd,hdD->hsD', ctx.astype(jnp.bfloat16), wo_ref[0],
                         preferred_element_type=jnp.float32)   # (H, S, D)
    cur = jnp.sum(partial, axis=0) + bo_ref[0]                 # (S, D) f32

    # --- fused highway stack (row-wise on the same tile).
    for l in range(n_highway):
        cb = cur.astype(jnp.bfloat16)
        nonlin = jnp.maximum(
            jnp.dot(cb, whn_ref[0, l], preferred_element_type=jnp.float32)
            + bhn_ref[0, l], 0.0)
        gate = jax.nn.sigmoid(
            jnp.dot(cb, whg_ref[0, l], preferred_element_type=jnp.float32)
            + bhg_ref[0, l])
        cur = gate * cur + (1.0 - gate) * nonlin

    if add_residual:
        cur = cur + x

    o_ref[0, 0] = cur


# ----------------------------------------------------------------------------
# Pallas wrapper: one call handles both directions and the whole batch
# ----------------------------------------------------------------------------
def fused_attn_highway(x_stacked, lp, *, add_residual):
    """x_stacked: (2, B, S, D) f32 (dir 0 = forward, 1 = backward)."""
    _, B, S, D = x_stacked.shape
    H, P, d_k = lp['rel'].shape[1], lp['rel'].shape[2], lp['rel'].shape[3]
    n_hw = lp['whn'].shape[1]

    kernel = functools.partial(
        _fused_layer_kernel, num_heads=H, d_k=d_k, n_rel=P,
        n_highway=n_hw, add_residual=add_residual, seq_len=S)

    def dmap3(d, b):
        return (d, 0, 0)

    def dmap4(d, b):
        return (d, 0, 0, 0)

    in_specs = [
        pl.BlockSpec((1, 1, S, D), lambda d, b: (d, b, 0, 0)),   # x
        pl.BlockSpec((1, D, D), dmap3),                          # wq
        pl.BlockSpec((1, D, D), dmap3),                          # wk
        pl.BlockSpec((1, D, D), dmap3),                          # wv
        pl.BlockSpec((1, H, d_k, D), dmap4),                     # wo (per head)
        pl.BlockSpec((1, 1, D), dmap3),                          # bq
        pl.BlockSpec((1, 1, D), dmap3),                          # bk
        pl.BlockSpec((1, 1, D), dmap3),                          # bv
        pl.BlockSpec((1, 1, D), dmap3),                          # bo
        pl.BlockSpec((1, H, P, d_k), dmap4),                     # rel
        pl.BlockSpec((1, n_hw, D, D), dmap4),                    # highway W_nonlin
        pl.BlockSpec((1, n_hw, 1, D), dmap4),                    # highway b_nonlin
        pl.BlockSpec((1, n_hw, D, D), dmap4),                    # highway W_gate
        pl.BlockSpec((1, n_hw, 1, D), dmap4),                    # highway b_gate
    ]
    out_spec = pl.BlockSpec((1, 1, S, D), lambda d, b: (d, b, 0, 0))

    args = (x_stacked, lp['wq'], lp['wk'], lp['wv'], lp['wo'],
            lp['bq'], lp['bk'], lp['bv'], lp['bo'],
            lp['rel'],
            lp['whn'], lp['bhn'], lp['whg'], lp['bhg'])

    # VMEM budget: double-buffered blocks + intermediates + headroom,
    # capped under the v7x 64 MiB physical VMEM.
    blocks = [
        ((1, 1, S, D), 4),
        ((1, D, D), 2), ((1, D, D), 2), ((1, D, D), 2),
        ((1, H, d_k, D), 2),
        ((1, 1, D), 4), ((1, 1, D), 4), ((1, 1, D), 4), ((1, 1, D), 4),
        ((1, H, P, d_k), 2),
        ((1, n_hw, D, D), 2), ((1, n_hw, 1, D), 4),
        ((1, n_hw, D, D), 2), ((1, n_hw, 1, D), 4),
        ((1, 1, S, D), 4),                                       # output block
    ]
    bytes_per_step = sum(math.prod(bs) * isz for bs, isz in blocks)
    interm = (3 * H * S * S + 6 * S * D) * 4                     # scores/exp/p + qkv/cur
    vmem_limit = int(min(64 * 2 ** 20, 2 * bytes_per_step + interm + 8 * 2 ** 20))

    n_steps = 2 * B
    matmul_flops = (3 * 2 * S * D * D        # qkv projections
                    + 2 * S * S * D          # QK^T (all heads)
                    + 2 * S * P * D          # relative scores
                    + 2 * S * S * D          # PV
                    + 2 * S * D * D          # output projection
                    + n_hw * 4 * S * D * D)  # highway nonlin + gate
    cost = pl.CostEstimate(
        flops=int(n_steps * matmul_flops),
        transcendentals=int(n_steps * (H * S * S + n_hw * S * D)),
        bytes_accessed=int(sum(math.prod(a.shape) * a.dtype.itemsize
                               for a in args) + 2 * B * S * D * 4),
    )

    return pl.pallas_call(
        kernel,
        out_shape=jax.ShapeDtypeStruct((2, B, S, D), jnp.float32),
        grid=(2, B),
        in_specs=in_specs,
        out_specs=out_spec,
        compiler_params=pltpu.CompilerParams(
            dimension_semantics=("parallel", "parallel"),
            vmem_limit_bytes=vmem_limit),
        cost_estimate=cost,
    )(*args)


# ----------------------------------------------------------------------------
# Plain-JAX glue: parameter setup, layer loop
# ----------------------------------------------------------------------------
def init_params(key, hidden, n_heads, n_layers, n_highway, lm_width):
    """Per-layer params, stacked over direction (axis 0: 0=fwd, 1=bwd), f32."""
    assert hidden % n_heads == 0
    d_k = hidden // n_heads
    P = lm_width + 2                # attention width (lm_width+1) + 1
    layers = []
    for _ in range(n_layers):
        key, *ks = jax.random.split(key, 12)

        def nrm(kk, shape, s=0.05):
            return jax.random.normal(kk, shape, jnp.float32) * s

        layers.append({
            'wq': nrm(ks[0], (2, hidden, hidden)),
            'wk': nrm(ks[1], (2, hidden, hidden)),
            'wv': nrm(ks[2], (2, hidden, hidden)),
            'wo': nrm(ks[3], (2, hidden, hidden)),
            'bq': nrm(ks[4], (2, 1, hidden)),
            'bk': nrm(ks[5], (2, 1, hidden)),
            'bv': nrm(ks[6], (2, 1, hidden)),
            'bo': nrm(ks[7], (2, 1, hidden)),
            'rel': jax.random.normal(ks[8], (2, n_heads, P, d_k),
                                     jnp.float32) / math.sqrt(d_k),
            'whn': nrm(ks[9], (2, n_highway, hidden, hidden)),
            'whg': nrm(ks[10], (2, n_highway, hidden, hidden)),
            'bhn': jnp.zeros((2, n_highway, 1, hidden), jnp.float32),
            'bhg': jnp.ones((2, n_highway, 1, hidden), jnp.float32),  # gate bias = 1
        })
    return layers


def _prepare_layer(layer, n_heads):
    """Cast weights to bf16 and split the output projection rows per head."""
    D = layer['wq'].shape[-1]
    d_k = D // n_heads
    out = dict(layer)
    for name in ('wq', 'wk', 'wv', 'whn', 'whg', 'rel'):
        out[name] = layer[name].astype(jnp.bfloat16)
    # concat(heads) @ Wo == sum_h head_h @ Wo[h*d_k:(h+1)*d_k, :]
    out['wo'] = layer['wo'].reshape(2, n_heads, d_k, D).astype(jnp.bfloat16)
    return out


@functools.partial(jax.jit, static_argnames=('lm_width', 'n_heads'))
def self_attentive_lbl_bilm_v3(inputs, masks, params, *, lm_width, n_heads):
    del masks, lm_width             # masks unused by the reference forward();
                                    # the window is carried by rel.shape[2].
    B, S, D = inputs.shape
    fwd = bwd = inputs
    outs = []
    for layer_idx, layer in enumerate(params):
        lp = _prepare_layer(layer, n_heads)
        x_stacked = jnp.stack([fwd, bwd], axis=0)          # (2, B, S, D)
        y = fused_attn_highway(x_stacked, lp,
                               add_residual=(layer_idx != 0))
        fwd, bwd = y[0], y[1]
        outs.append(jnp.concatenate([fwd, bwd], axis=-1))
    return jnp.stack(outs, axis=0)                          # (n_layers, B, S, 2D)


# ----------------------------------------------------------------------------
if __name__ == "__main__":
    key = jax.random.PRNGKey(0)
    B, S, hidden = 2, 8, 32
    n_heads, n_layers, n_highway, width = 4, 2, 1, 2        # input_size == hidden_size

    kx, kp = jax.random.split(key)
    inputs = jax.random.normal(kx, (B, S, hidden), jnp.float32)
    masks = jnp.ones((B, S), jnp.float32)                   # unused by forward()

    params = init_params(kp, hidden, n_heads, n_layers, n_highway, width)
    out = self_attentive_lbl_bilm_v3(inputs, masks, params,
                                     lm_width=width, n_heads=n_heads)
    out = jax.block_until_ready(out)

    assert out.shape == (n_layers, B, S, 2 * hidden), out.shape
    assert bool(jnp.all(jnp.isfinite(out)))
    print("KERNEL_OK")
</pallas_src>

<mosaic_0001>
module attributes {stable_mosaic.version = 11 : i64} {
  func.func @_fused_layer_kernel(%arg0: i32, %arg1: i32, %arg2: memref<1x1x8x32xf32, #tpu.memory_space<vmem>>, %arg3: memref<1x32x32xbf16, #tpu.memory_space<vmem>>, %arg4: memref<1x32x32xbf16, #tpu.memory_space<vmem>>, %arg5: memref<1x32x32xbf16, #tpu.memory_space<vmem>>, %arg6: memref<1x4x8x32xbf16, #tpu.memory_space<vmem>>, %arg7: memref<1x1x32xf32, #tpu.memory_space<vmem>>, %arg8: memref<1x1x32xf32, #tpu.memory_space<vmem>>, %arg9: memref<1x1x32xf32, #tpu.memory_space<vmem>>, %arg10: memref<1x1x32xf32, #tpu.memory_space<vmem>>, %arg11: memref<1x4x4x8xbf16, #tpu.memory_space<vmem>>, %arg12: memref<1x1x32x32xbf16, #tpu.memory_space<vmem>>, %arg13: memref<1x1x1x32xf32, #tpu.memory_space<vmem>>, %arg14: memref<1x1x32x32xbf16, #tpu.memory_space<vmem>>, %arg15: memref<1x1x1x32xf32, #tpu.memory_space<vmem>>, %arg16: memref<1x1x8x32xf32, #tpu.memory_space<vmem>>) attributes {dimension_semantics = [#tpu.dimension_semantics<parallel>, #tpu.dimension_semantics<parallel>], iteration_bounds = array<i64: 2, 2>, scalar_prefetch = 0 : i64, scratch_operands = 0 : i64, tpu.core_type = #tpu.core_type<tc>, window_params = [{transform_indices = @transform_0, window_bounds = array<i64: 1, 1, 8, 32>}, {transform_indices = @transform_1, window_bounds = array<i64: 1, 32, 32>}, {transform_indices = @transform_2, window_bounds = array<i64: 1, 32, 32>}, {transform_indices = @transform_3, window_bounds = array<i64: 1, 32, 32>}, {transform_indices = @transform_4, window_bounds = array<i64: 1, 4, 8, 32>}, {transform_indices = @transform_5, window_bounds = array<i64: 1, 1, 32>}, {transform_indices = @transform_6, window_bounds = array<i64: 1, 1, 32>}, {transform_indices = @transform_7, window_bounds = array<i64: 1, 1, 32>}, {transform_indices = @transform_8, window_bounds = array<i64: 1, 1, 32>}, {transform_indices = @transform_9, window_bounds = array<i64: 1, 4, 4, 8>}, {transform_indices = @transform_10, window_bounds = array<i64: 1, 1, 32, 32>}, {transform_indices = @transform_11, window_bounds = array<i64: 1, 1, 1, 32>}, {transform_indices = @transform_12, window_bounds = array<i64: 1, 1, 32, 32>}, {transform_indices = @transform_13, window_bounds = array<i64: 1, 1, 1, 32>}, {transform_indices = @transform_14, window_bounds = array<i64: 1, 1, 8, 32>}]} {
    %c0 = arith.constant 0 : index
    %c0_0 = arith.constant 0 : index
    %c0_1 = arith.constant 0 : index
    %c0_2 = arith.constant 0 : index
    %0 = vector.load %arg2[%c0, %c0_0, %c0_1, %c0_2] : memref<1x1x8x32xf32, #tpu.memory_space<vmem>>, vector<1x1x8x32xf32>
    %1 = vector.shape_cast %0 : vector<1x1x8x32xf32> to vector<8x32xf32>
    %2 = arith.truncf %1 : vector<8x32xf32> to vector<8x32xbf16>
    %c0_3 = arith.constant 0 : index
    %c0_4 = arith.constant 0 : index
    %c0_5 = arith.constant 0 : index
    %3 = vector.load %arg3[%c0_3, %c0_4, %c0_5] : memref<1x32x32xbf16, #tpu.memory_space<vmem>>, vector<1x32x32xbf16>
    %4 = vector.shape_cast %3 : vector<1x32x32xbf16> to vector<32x32xbf16>
    %cst = arith.constant dense<0.000000e+00> : vector<8x32xf32>
    %5 = tpu.matmul %2, %4, %cst {dimension_numbers = #tpu.dot_dimension_numbers<[1], [0], [0], [1], [0, 0, 1, 1], [], []>} : vector<8x32xbf16>, vector<32x32xbf16>, vector<8x32xf32> -> vector<8x32xf32>
    %c0_6 = arith.constant 0 : index
    %c0_7 = arith.constant 0 : index
    %c0_8 = arith.constant 0 : index
    %6 = vector.load %arg7[%c0_6, %c0_7, %c0_8] : memref<1x1x32xf32, #tpu.memory_space<vmem>>, vector<1x1x32xf32>
    %7 = vector.shape_cast %6 : vector<1x1x32xf32> to vector<1x32xf32>
    %8 = vector.broadcast %7 : vector<1x32xf32> to vector<8x32xf32>
    %9 = arith.addf %5, %8 : vector<8x32xf32>
    %c0_9 = arith.constant 0 : index
    %c0_10 = arith.constant 0 : index
    %c0_11 = arith.constant 0 : index
    %10 = vector.load %arg4[%c0_9, %c0_10, %c0_11] : memref<1x32x32xbf16, #tpu.memory_space<vmem>>, vector<1x32x32xbf16>
    %11 = vector.shape_cast %10 : vector<1x32x32xbf16> to vector<32x32xbf16>
    %cst_12 = arith.constant dense<0.000000e+00> : vector<8x32xf32>
    %12 = tpu.matmul %2, %11, %cst_12 {dimension_numbers = #tpu.dot_dimension_numbers<[1], [0], [0], [1], [0, 0, 1, 1], [], []>} : vector<8x32xbf16>, vector<32x32xbf16>, vector<8x32xf32> -> vector<8x32xf32>
    %c0_13 = arith.constant 0 : index
    %c0_14 = arith.constant 0 : index
    %c0_15 = arith.constant 0 : index
    %13 = vector.load %arg8[%c0_13, %c0_14, %c0_15] : memref<1x1x32xf32, #tpu.memory_space<vmem>>, vector<1x1x32xf32>
    %14 = vector.shape_cast %13 : vector<1x1x32xf32> to vector<1x32xf32>
    %15 = vector.broadcast %14 : vector<1x32xf32> to vector<8x32xf32>
    %16 = arith.addf %12, %15 : vector<8x32xf32>
    %c0_16 = arith.constant 0 : index
    %c0_17 = arith.constant 0 : index
    %c0_18 = arith.constant 0 : index
    %17 = vector.load %arg5[%c0_16, %c0_17, %c0_18] : memref<1x32x32xbf16, #tpu.memory_space<vmem>>, vector<1x32x32xbf16>
    %18 = vector.shape_cast %17 : vector<1x32x32xbf16> to vector<32x32xbf16>
    %cst_19 = arith.constant dense<0.000000e+00> : vector<8x32xf32>
    %19 = tpu.matmul %2, %18, %cst_19 {dimension_numbers = #tpu.dot_dimension_numbers<[1], [0], [0], [1], [0, 0, 1, 1], [], []>} : vector<8x32xbf16>, vector<32x32xbf16>, vector<8x32xf32> -> vector<8x32xf32>
    %c0_20 = arith.constant 0 : index
    %c0_21 = arith.constant 0 : index
    %c0_22 = arith.constant 0 : index
    %20 = vector.load %arg9[%c0_20, %c0_21, %c0_22] : memref<1x1x32xf32, #tpu.memory_space<vmem>>, vector<1x1x32xf32>
    %21 = vector.shape_cast %20 : vector<1x1x32xf32> to vector<1x32xf32>
    %22 = vector.broadcast %21 : vector<1x32xf32> to vector<8x32xf32>
    %23 = arith.addf %19, %22 : vector<8x32xf32>
    %cst_23 = arith.constant 0.353553385 : f32
    %24 = vector.broadcast %cst_23 : f32 to vector<8x32xf32>
    %25 = arith.mulf %9, %24 : vector<8x32xf32>
    %26 = vector.extract_strided_slice %25 {offsets = [0, 0], sizes = [8, 8], strides = [1, 1]} : vector<8x32xf32> to vector<8x8xf32>
    %27 = vector.extract_strided_slice %25 {offsets = [0, 8], sizes = [8, 8], strides = [1, 1]} : vector<8x32xf32> to vector<8x8xf32>
    %28 = vector.extract_strided_slice %25 {offsets = [0, 16], sizes = [8, 8], strides = [1, 1]} : vector<8x32xf32> to vector<8x8xf32>
    %29 = vector.extract_strided_slice %25 {offsets = [0, 24], sizes = [8, 8], strides = [1, 1]} : vector<8x32xf32> to vector<8x8xf32>
    %30 = vector.shape_cast %26 : vector<8x8xf32> to vector<1x8x8xf32>
    %31 = vector.shape_cast %27 : vector<8x8xf32> to vector<1x8x8xf32>
    %32 = vector.shape_cast %28 : vector<8x8xf32> to vector<1x8x8xf32>
    %33 = vector.shape_cast %29 : vector<8x8xf32> to vector<1x8x8xf32>
    %34 = tpu.concatenate %30, %31, %32, %33 in 0 : vector<1x8x8xf32>, vector<1x8x8xf32>, vector<1x8x8xf32>, vector<1x8x8xf32> -> vector<4x8x8xf32>
    %35 = arith.truncf %34 : vector<4x8x8xf32> to vector<4x8x8xbf16>
    %36 = vector.extract_strided_slice %16 {offsets = [0, 0], sizes = [8, 8], strides = [1, 1]} : vector<8x32xf32> to vector<8x8xf32>
    %37 = vector.extract_strided_slice %16 {offsets = [0, 8], sizes = [8, 8], strides = [1, 1]} : vector<8x32xf32> to vector<8x8xf32>
    %38 = vector.extract_strided_slice %16 {offsets = [0, 16], sizes = [8, 8], strides = [1, 1]} : vector<8x32xf32> to vector<8x8xf32>
    %39 = vector.extract_strided_slice %16 {offsets = [0, 24], sizes = [8, 8], strides = [1, 1]} : vector<8x32xf32> to vector<8x8xf32>
    %40 = vector.shape_cast %36 : vector<8x8xf32> to vector<1x8x8xf32>
    %41 = vector.shape_cast %37 : vector<8x8xf32> to vector<1x8x8xf32>
    %42 = vector.shape_cast %38 : vector<8x8xf32> to vector<1x8x8xf32>
    %43 = vector.shape_cast %39 : vector<8x8xf32> to vector<1x8x8xf32>
    %44 = tpu.concatenate %40, %41, %42, %43 in 0 : vector<1x8x8xf32>, vector<1x8x8xf32>, vector<1x8x8xf32>, vector<1x8x8xf32> -> vector<4x8x8xf32>
    %45 = arith.truncf %44 : vector<4x8x8xf32> to vector<4x8x8xbf16>
    %46 = vector.extract_strided_slice %23 {offsets = [0, 0], sizes = [8, 8], strides = [1, 1]} : vector<8x32xf32> to vector<8x8xf32>
    %47 = vector.extract_strided_slice %23 {offsets = [0, 8], sizes = [8, 8], strides = [1, 1]} : vector<8x32xf32> to vector<8x8xf32>
    %48 = vector.extract_strided_slice %23 {offsets = [0, 16], sizes = [8, 8], strides = [1, 1]} : vector<8x32xf32> to vector<8x8xf32>
    %49 = vector.extract_strided_slice %23 {offsets = [0, 24], sizes = [8, 8], strides = [1, 1]} : vector<8x32xf32> to vector<8x8xf32>
    %50 = vector.shape_cast %46 : vector<8x8xf32> to vector<1x8x8xf32>
    %51 = vector.shape_cast %47 : vector<8x8xf32> to vector<1x8x8xf32>
    %52 = vector.shape_cast %48 : vector<8x8xf32> to vector<1x8x8xf32>
    %53 = vector.shape_cast %49 : vector<8x8xf32> to vector<1x8x8xf32>
    %54 = tpu.concatenate %50, %51, %52, %53 in 0 : vector<1x8x8xf32>, vector<1x8x8xf32>, vector<1x8x8xf32>, vector<1x8x8xf32> -> vector<4x8x8xf32>
    %55 = arith.truncf %54 : vector<4x8x8xf32> to vector<4x8x8xbf16>
    "tpu.trace_start"() <{level = 10 : i32, message = "hqd,hkd->hqk"}> : () -> ()
    %cst_24 = arith.constant dense<0.000000e+00> : vector<4x8x8xf32>
    %56 = tpu.matmul %35, %45, %cst_24 {dimension_numbers = #tpu.dot_dimension_numbers<[2], [2], [1], [1], [0, 0, 0, 1, 1, 1], [0], [0]>} : vector<4x8x8xbf16>, vector<4x8x8xbf16>, vector<4x8x8xf32> -> vector<4x8x8xf32>
    "tpu.trace_stop"() : () -> ()
    %c0_25 = arith.constant 0 : index
    %c0_26 = arith.constant 0 : index
    %c0_27 = arith.constant 0 : index
    %c0_28 = arith.constant 0 : index
    %57 = vector.load %arg11[%c0_25, %c0_26, %c0_27, %c0_28] : memref<1x4x4x8xbf16, #tpu.memory_space<vmem>>, vector<1x4x4x8xbf16>
    %58 = vector.shape_cast %57 : vector<1x4x4x8xbf16> to vector<4x4x8xbf16>
    "tpu.trace_start"() <{level = 10 : i32, message = "hqd,hpd->hqp"}> : () -> ()
    %cst_29 = arith.constant dense<0.000000e+00> : vector<4x8x4xf32>
    %59 = tpu.matmul %35, %58, %cst_29 {dimension_numbers = #tpu.dot_dimension_numbers<[2], [2], [1], [1], [0, 0, 0, 1, 1, 1], [0], [0]>} : vector<4x8x8xbf16>, vector<4x4x8xbf16>, vector<4x8x4xf32> -> vector<4x8x4xf32>
    "tpu.trace_stop"() : () -> ()
    %c0_i32 = arith.constant 0 : i32
    %60 = arith.cmpi eq, %arg0, %c0_i32 : i32
    %61 = arith.extui %60 : i1 to i32
    %c2_i32 = arith.constant 2 : i32
    %62 = arith.muli %c2_i32, %61 : i32
    %c1_i32 = arith.constant 1 : i32
    %63 = arith.subi %62, %c1_i32 : i32
    %64 = tpu.iota {dimensions = array<i32: 0>} : vector<8x8xi32>
    %65 = tpu.iota {dimensions = array<i32: 1>} : vector<8x8xi32>
    %66 = arith.subi %64, %65 : vector<8x8xi32>
    %67 = vector.broadcast %63 : i32 to vector<8x8xi32>
    %68 = arith.muli %67, %66 : vector<8x8xi32>
    %c0_i32_30 = arith.constant 0 : i32
    %69 = vector.broadcast %c0_i32_30 : i32 to vector<8x8xi32>
    %70 = arith.cmpi sge, %68, %69 : vector<8x8xi32>
    %c3_i32 = arith.constant 3 : i32
    %71 = vector.broadcast %c3_i32 : i32 to vector<8x8xi32>
    %72 = arith.cmpi sle, %68, %71 : vector<8x8xi32>
    %73 = arith.andi %70, %72 : vector<8x8xi1>
    %c3_i32_31 = arith.constant 3 : i32
    %74 = arith.muli %61, %c3_i32_31 : i32
    %c2_i32_32 = arith.constant 2 : i32
    %75 = arith.muli %c2_i32_32, %61 : i32
    %c1_i32_33 = arith.constant 1 : i32
    %76 = arith.subi %c1_i32_33, %75 : i32
    %77 = vector.broadcast %76 : i32 to vector<8x8xi32>
    %78 = arith.muli %77, %68 : vector<8x8xi32>
    %79 = vector.broadcast %74 : i32 to vector<8x8xi32>
    %80 = arith.addi %79, %78 : vector<8x8xi32>
    %c0_i32_34 = arith.constant 0 : i32
    %81 = vector.broadcast %c0_i32_34 : i32 to vector<8x8xi32>
    %82 = arith.cmpi eq, %80, %81 : vector<8x8xi32>
    %83 = arith.andi %73, %82 : vector<8x8xi1>
    %84 = vector.shape_cast %83 : vector<8x8xi1> to vector<1x8x8xi1>
    %85 = vector.extract_strided_slice %59 {offsets = [0, 0, 0], sizes = [4, 8, 1], strides = [1, 1, 1]} : vector<4x8x4xf32> to vector<4x8x1xf32>
    %cst_35 = arith.constant 0.000000e+00 : f32
    %86 = vector.shape_cast %84 : vector<1x8x8xi1> to vector<1x8x8xi1>
    %87 = vector.broadcast %86 : vector<1x8x8xi1> to vector<4x8x8xi1>
    %88 = vector.shape_cast %85 : vector<4x8x1xf32> to vector<4x8x1xf32>
    %89 = vector.broadcast %88 : vector<4x8x1xf32> to vector<4x8x8xf32>
    %90 = vector.broadcast %cst_35 : f32 to vector<4x8x8xf32>
    %91 = arith.select %87, %89, %90 : vector<4x8x8xi1>, vector<4x8x8xf32>
    %92 = arith.addf %56, %91 : vector<4x8x8xf32>
    %c1_i32_36 = arith.constant 1 : i32
    %93 = vector.broadcast %c1_i32_36 : i32 to vector<8x8xi32>
    %94 = arith.cmpi eq, %80, %93 : vector<8x8xi32>
    %95 = arith.andi %73, %94 : vector<8x8xi1>
    %96 = vector.shape_cast %95 : vector<8x8xi1> to vector<1x8x8xi1>
    %97 = vector.extract_strided_slice %59 {offsets = [0, 0, 1], sizes = [4, 8, 1], strides = [1, 1, 1]} : vector<4x8x4xf32> to vector<4x8x1xf32>
    %cst_37 = arith.constant 0.000000e+00 : f32
    %98 = vector.shape_cast %96 : vector<1x8x8xi1> to vector<1x8x8xi1>
    %99 = vector.broadcast %98 : vector<1x8x8xi1> to vector<4x8x8xi1>
    %100 = vector.shape_cast %97 : vector<4x8x1xf32> to vector<4x8x1xf32>
    %101 = vector.broadcast %100 : vector<4x8x1xf32> to vector<4x8x8xf32>
    %102 = vector.broadcast %cst_37 : f32 to vector<4x8x8xf32>
    %103 = arith.select %99, %101, %102 : vector<4x8x8xi1>, vector<4x8x8xf32>
    %104 = arith.addf %92, %103 : vector<4x8x8xf32>
    %c2_i32_38 = arith.constant 2 : i32
    %105 = vector.broadcast %c2_i32_38 : i32 to vector<8x8xi32>
    %106 = arith.cmpi eq, %80, %105 : vector<8x8xi32>
    %107 = arith.andi %73, %106 : vector<8x8xi1>
    %108 = vector.shape_cast %107 : vector<8x8xi1> to vector<1x8x8xi1>
    %109 = vector.extract_strided_slice %59 {offsets = [0, 0, 2], sizes = [4, 8, 1], strides = [1, 1, 1]} : vector<4x8x4xf32> to vector<4x8x1xf32>
    %cst_39 = arith.constant 0.000000e+00 : f32
    %110 = vector.shape_cast %108 : vector<1x8x8xi1> to vector<1x8x8xi1>
    %111 = vector.broadcast %110 : vector<1x8x8xi1> to vector<4x8x8xi1>
    %112 = vector.shape_cast %109 : vector<4x8x1xf32> to vector<4x8x1xf32>
    %113 = vector.broadcast %112 : vector<4x8x1xf32> to vector<4x8x8xf32>
    %114 = vector.broadcast %cst_39 : f32 to vector<4x8x8xf32>
    %115 = arith.select %111, %113, %114 : vector<4x8x8xi1>, vector<4x8x8xf32>
    %116 = arith.addf %104, %115 : vector<4x8x8xf32>
    %c3_i32_40 = arith.constant 3 : i32
    %117 = vector.broadcast %c3_i32_40 : i32 to vector<8x8xi32>
    %118 = arith.cmpi eq, %80, %117 : vector<8x8xi32>
    %119 = arith.andi %73, %118 : vector<8x8xi1>
    %120 = vector.shape_cast %119 : vector<8x8xi1> to vector<1x8x8xi1>
    %121 = vector.extract_strided_slice %59 {offsets = [0, 0, 3], sizes = [4, 8, 1], strides = [1, 1, 1]} : vector<4x8x4xf32> to vector<4x8x1xf32>
    %cst_41 = arith.constant 0.000000e+00 : f32
    %122 = vector.shape_cast %120 : vector<1x8x8xi1> to vector<1x8x8xi1>
    %123 = vector.broadcast %122 : vector<1x8x8xi1> to vector<4x8x8xi1>
    %124 = vector.shape_cast %121 : vector<4x8x1xf32> to vector<4x8x1xf32>
    %125 = vector.broadcast %124 : vector<4x8x1xf32> to vector<4x8x8xf32>
    %126 = vector.broadcast %cst_41 : f32 to vector<4x8x8xf32>
    %127 = arith.select %123, %125, %126 : vector<4x8x8xi1>, vector<4x8x8xf32>
    %128 = arith.addf %116, %127 : vector<4x8x8xf32>
    %129 = vector.shape_cast %73 : vector<8x8xi1> to vector<1x8x8xi1>
    %cst_42 = arith.constant -1.000000e+09 : f32
    %130 = vector.shape_cast %129 : vector<1x8x8xi1> to vector<1x8x8xi1>
    %131 = vector.broadcast %130 : vector<1x8x8xi1> to vector<4x8x8xi1>
    %132 = vector.broadcast %cst_42 : f32 to vector<4x8x8xf32>
    %133 = arith.select %131, %128, %132 : vector<4x8x8xi1>, vector<4x8x8xf32>
    %cst_43 = arith.constant dense<0xFF800000> : vector<4x8xf32>
    %134 = vector.multi_reduction <maximumf>, %133, %cst_43 [2] : vector<4x8x8xf32> to vector<4x8xf32>
    %135 = vector.shape_cast %134 : vector<4x8xf32> to vector<4x8x1xf32>
    %136 = vector.broadcast %135 : vector<4x8x1xf32> to vector<4x8x8xf32>
    %137 = arith.subf %133, %136 : vector<4x8x8xf32>
    %138 = math.exp %137 : vector<4x8x8xf32>
    %cst_44 = arith.constant dense<0.000000e+00> : vector<4x8xf32>
    %139 = vector.multi_reduction <add>, %138, %cst_44 [2] : vector<4x8x8xf32> to vector<4x8xf32>
    %140 = vector.shape_cast %139 : vector<4x8xf32> to vector<4x8x1xf32>
    %141 = tpu.reciprocal %140 {approx = true} : vector<4x8x1xf32> -> vector<4x8x1xf32>
    %142 = vector.broadcast %141 : vector<4x8x1xf32> to vector<4x8x8xf32>
    %143 = arith.mulf %138, %142 : vector<4x8x8xf32>
    %144 = arith.truncf %143 : vector<4x8x8xf32> to vector<4x8x8xbf16>
    "tpu.trace_start"() <{level = 10 : i32, message = "hqk,hkd->hqd"}> : () -> ()
    %cst_45 = arith.constant dense<0.000000e+00> : vector<4x8x8xf32>
    %145 = tpu.matmul %144, %55, %cst_45 {dimension_numbers = #tpu.dot_dimension_numbers<[2], [1], [1], [2], [0, 0, 0, 1, 1, 2], [0], [0]>} : vector<4x8x8xbf16>, vector<4x8x8xbf16>, vector<4x8x8xf32> -> vector<4x8x8xf32>
    "tpu.trace_stop"() : () -> ()
    %146 = arith.truncf %145 : vector<4x8x8xf32> to vector<4x8x8xbf16>
    %c0_46 = arith.constant 0 : index
    %c0_47 = arith.constant 0 : index
    %c0_48 = arith.constant 0 : index
    %c0_49 = arith.constant 0 : index
    %147 = vector.load %arg6[%c0_46, %c0_47, %c0_48, %c0_49] : memref<1x4x8x32xbf16, #tpu.memory_space<vmem>>, vector<1x4x8x32xbf16>
    %148 = vector.shape_cast %147 : vector<1x4x8x32xbf16> to vector<4x8x32xbf16>
    "tpu.trace_start"() <{level = 10 : i32, message = "hsd,hdD->hsD"}> : () -> ()
    %cst_50 = arith.constant dense<0.000000e+00> : vector<4x8x32xf32>
    %149 = tpu.matmul %146, %148, %cst_50 {dimension_numbers = #tpu.dot_dimension_numbers<[2], [1], [1], [2], [0, 0, 0, 1, 1, 2], [0], [0]>} : vector<4x8x8xbf16>, vector<4x8x32xbf16>, vector<4x8x32xf32> -> vector<4x8x32xf32>
    "tpu.trace_stop"() : () -> ()
    %cst_51 = arith.constant dense<0.000000e+00> : vector<8x32xf32>
    %150 = vector.multi_reduction <add>, %149, %cst_51 [0] : vector<4x8x32xf32> to vector<8x32xf32>
    %c0_52 = arith.constant 0 : index
    %c0_53 = arith.constant 0 : index
    %c0_54 = arith.constant 0 : index
    %151 = vector.load %arg10[%c0_52, %c0_53, %c0_54] : memref<1x1x32xf32, #tpu.memory_space<vmem>>, vector<1x1x32xf32>
    %152 = vector.shape_cast %151 : vector<1x1x32xf32> to vector<1x32xf32>
    %153 = vector.broadcast %152 : vector<1x32xf32> to vector<8x32xf32>
    %154 = arith.addf %150, %153 : vector<8x32xf32>
    %155 = arith.truncf %154 : vector<8x32xf32> to vector<8x32xbf16>
    %c0_55 = arith.constant 0 : index
    %c0_56 = arith.constant 0 : index
    %c0_57 = arith.constant 0 : index
    %c0_58 = arith.constant 0 : index
    %156 = vector.load %arg12[%c0_55, %c0_56, %c0_57, %c0_58] : memref<1x1x32x32xbf16, #tpu.memory_space<vmem>>, vector<1x1x32x32xbf16>
    %157 = vector.shape_cast %156 : vector<1x1x32x32xbf16> to vector<32x32xbf16>
    %cst_59 = arith.constant dense<0.000000e+00> : vector<8x32xf32>
    %158 = tpu.matmul %155, %157, %cst_59 {dimension_numbers = #tpu.dot_dimension_numbers<[1], [0], [0], [1], [0, 0, 1, 1], [], []>} : vector<8x32xbf16>, vector<32x32xbf16>, vector<8x32xf32> -> vector<8x32xf32>
    %c0_60 = arith.constant 0 : index
    %c0_61 = arith.constant 0 : index
    %c0_62 = arith.constant 0 : index
    %c0_63 = arith.constant 0 : index
    %159 = vector.load %arg13[%c0_60, %c0_61, %c0_62, %c0_63] : memref<1x1x1x32xf32, #tpu.memory_space<vmem>>, vector<1x1x1x32xf32>
    %160 = vector.shape_cast %159 : vector<1x1x1x32xf32> to vector<1x32xf32>
    %161 = vector.broadcast %160 : vector<1x32xf32> to vector<8x32xf32>
    %162 = arith.addf %158, %161 : vector<8x32xf32>
    %cst_64 = arith.constant 0.000000e+00 : f32
    %163 = vector.broadcast %cst_64 : f32 to vector<8x32xf32>
    %164 = arith.maximumf %162, %163 : vector<8x32xf32>
    %c0_65 = arith.constant 0 : index
    %c0_66 = arith.constant 0 : index
    %c0_67 = arith.constant 0 : index
    %c0_68 = arith.constant 0 : index
    %165 = vector.load %arg14[%c0_65, %c0_66, %c0_67, %c0_68] : memref<1x1x32x32xbf16, #tpu.memory_space<vmem>>, vector<1x1x32x32xbf16>
    %166 = vector.shape_cast %165 : vector<1x1x32x32xbf16> to vector<32x32xbf16>
    %cst_69 = arith.constant dense<0.000000e+00> : vector<8x32xf32>
    %167 = tpu.matmul %155, %166, %cst_69 {dimension_numbers = #tpu.dot_dimension_numbers<[1], [0], [0], [1], [0, 0, 1, 1], [], []>} : vector<8x32xbf16>, vector<32x32xbf16>, vector<8x32xf32> -> vector<8x32xf32>
    %c0_70 = arith.constant 0 : index
    %c0_71 = arith.constant 0 : index
    %c0_72 = arith.constant 0 : index
    %c0_73 = arith.constant 0 : index
    %168 = vector.load %arg15[%c0_70, %c0_71, %c0_72, %c0_73] : memref<1x1x1x32xf32, #tpu.memory_space<vmem>>, vector<1x1x1x32xf32>
    %169 = vector.shape_cast %168 : vector<1x1x1x32xf32> to vector<1x32xf32>
    %170 = vector.broadcast %169 : vector<1x32xf32> to vector<8x32xf32>
    %171 = arith.addf %167, %170 : vector<8x32xf32>
    %172 = arith.negf %171 : vector<8x32xf32>
    %173 = math.exp %172 : vector<8x32xf32>
    %cst_74 = arith.constant 1.000000e+00 : f32
    %174 = vector.broadcast %cst_74 : f32 to vector<8x32xf32>
    %175 = arith.addf %174, %173 : vector<8x32xf32>
    %176 = arith.divf %174, %175 : vector<8x32xf32>
    %177 = arith.mulf %176, %154 : vector<8x32xf32>
    %cst_75 = arith.constant 1.000000e+00 : f32
    %178 = vector.broadcast %cst_75 : f32 to vector<8x32xf32>
    %179 = arith.subf %178, %176 : vector<8x32xf32>
    %180 = arith.mulf %179, %164 : vector<8x32xf32>
    %181 = arith.addf %177, %180 : vector<8x32xf32>
    %c0_76 = arith.constant 0 : index
    %c0_77 = arith.constant 0 : index
    %c0_78 = arith.constant 0 : index
    %c0_79 = arith.constant 0 : index
    %182 = vector.load %arg16[%c0_76, %c0_77, %c0_78, %c0_79] : memref<1x1x8x32xf32, #tpu.memory_space<vmem>>, vector<1x1x8x32xf32>
    %183 = vector.shape_cast %182 : vector<1x1x8x32xf32> to vector<8x32xf32>
    %184 = vector.shape_cast %181 : vector<8x32xf32> to vector<1x1x8x32xf32>
    tpu.vector_store %arg16[%c0_76, %c0_77, %c0_78, %c0_79], %184 {strides = array<i32>} : memref<1x1x8x32xf32, #tpu.memory_space<vmem>>, vector<1x1x8x32xf32>,
    return
  }
  func.func @transform_0(%arg0: i32, %arg1: i32) -> (i32, i32, i32, i32) {
    %c0_i32 = arith.constant 0 : i32
    %c0_i32_0 = arith.constant 0 : i32
    %c0_i32_1 = arith.constant 0 : i32
    return %arg0, %arg1, %c0_i32, %c0_i32_0 : i32, i32, i32, i32
  }
  func.func @transform_1(%arg0: i32, %arg1: i32) -> (i32, i32, i32) {
    %c0_i32 = arith.constant 0 : i32
    %c0_i32_0 = arith.constant 0 : i32
    %c0_i32_1 = arith.constant 0 : i32
    return %arg0, %c0_i32, %c0_i32_0 : i32, i32, i32
  }
  func.func @transform_2(%arg0: i32, %arg1: i32) -> (i32, i32, i32) {
    %c0_i32 = arith.constant 0 : i32
    %c0_i32_0 = arith.constant 0 : i32
    %c0_i32_1 = arith.constant 0 : i32
    return %arg0, %c0_i32, %c0_i32_0 : i32, i32, i32
  }
  func.func @transform_3(%arg0: i32, %arg1: i32) -> (i32, i32, i32) {
    %c0_i32 = arith.constant 0 : i32
    %c0_i32_0 = arith.constant 0 : i32
    %c0_i32_1 = arith.constant 0 : i32
    return %arg0, %c0_i32, %c0_i32_0 : i32, i32, i32
  }
  func.func @transform_4(%arg0: i32, %arg1: i32) -> (i32, i32, i32, i32) {
    %c0_i32 = arith.constant 0 : i32
    %c0_i32_0 = arith.constant 0 : i32
    %c0_i32_1 = arith.constant 0 : i32
    %c0_i32_2 = arith.constant 0 : i32
    return %arg0, %c0_i32, %c0_i32_0, %c0_i32_1 : i32, i32, i32, i32
  }
  func.func @transform_5(%arg0: i32, %arg1: i32) -> (i32, i32, i32) {
    %c0_i32 = arith.constant 0 : i32
    %c0_i32_0 = arith.constant 0 : i32
    %c0_i32_1 = arith.constant 0 : i32
    return %arg0, %c0_i32, %c0_i32_0 : i32, i32, i32
  }
  func.func @transform_6(%arg0: i32, %arg1: i32) -> (i32, i32, i32) {
    %c0_i32 = arith.constant 0 : i32
    %c0_i32_0 = arith.constant 0 : i32
    %c0_i32_1 = arith.constant 0 : i32
    return %arg0, %c0_i32, %c0_i32_0 : i32, i32, i32
  }
  func.func @transform_7(%arg0: i32, %arg1: i32) -> (i32, i32, i32) {
    %c0_i32 = arith.constant 0 : i32
    %c0_i32_0 = arith.constant 0 : i32
    %c0_i32_1 = arith.constant 0 : i32
    return %arg0, %c0_i32, %c0_i32_0 : i32, i32, i32
  }
  func.func @transform_8(%arg0: i32, %arg1: i32) -> (i32, i32, i32) {
    %c0_i32 = arith.constant 0 : i32
    %c0_i32_0 = arith.constant 0 : i32
    %c0_i32_1 = arith.constant 0 : i32
    return %arg0, %c0_i32, %c0_i32_0 : i32, i32, i32
  }
  func.func @transform_9(%arg0: i32, %arg1: i32) -> (i32, i32, i32, i32) {
    %c0_i32 = arith.constant 0 : i32
    %c0_i32_0 = arith.constant 0 : i32
    %c0_i32_1 = arith.constant 0 : i32
    %c0_i32_2 = arith.constant 0 : i32
    return %arg0, %c0_i32, %c0_i32_0, %c0_i32_1 : i32, i32, i32, i32
  }
  func.func @transform_10(%arg0: i32, %arg1: i32) -> (i32, i32, i32, i32) {
    %c0_i32 = arith.constant 0 : i32
    %c0_i32_0 = arith.constant 0 : i32
    %c0_i32_1 = arith.constant 0 : i32
    %c0_i32_2 = arith.constant 0 : i32
    return %arg0, %c0_i32, %c0_i32_0, %c0_i32_1 : i32, i32, i32, i32
  }
  func.func @transform_11(%arg0: i32, %arg1: i32) -> (i32, i32, i32, i32) {
    %c0_i32 = arith.constant 0 : i32
    %c0_i32_0 = arith.constant 0 : i32
    %c0_i32_1 = arith.constant 0 : i32
    %c0_i32_2 = arith.constant 0 : i32
    return %arg0, %c0_i32, %c0_i32_0, %c0_i32_1 : i32, i32, i32, i32
  }
  func.func @transform_12(%arg0: i32, %arg1: i32) -> (i32, i32, i32, i32) {
    %c0_i32 = arith.constant 0 : i32
    %c0_i32_0 = arith.constant 0 : i32
    %c0_i32_1 = arith.constant 0 : i32
    %c0_i32_2 = arith.constant 0 : i32
    return %arg0, %c0_i32, %c0_i32_0, %c0_i32_1 : i32, i32, i32, i32
  }
  func.func @transform_13(%arg0: i32, %arg1: i32) -> (i32, i32, i32, i32) {
    %c0_i32 = arith.constant 0 : i32
    %c0_i32_0 = arith.constant 0 : i32
    %c0_i32_1 = arith.constant 0 : i32
    %c0_i32_2 = arith.constant 0 : i32
    return %arg0, %c0_i32, %c0_i32_0, %c0_i32_1 : i32, i32, i32, i32
  }
  func.func @transform_14(%arg0: i32, %arg1: i32) -> (i32, i32, i32, i32) {
    %c0_i32 = arith.constant 0 : i32
    %c0_i32_0 = arith.constant 0 : i32
    %c0_i32_1 = arith.constant 0 : i32
    return %arg0, %arg1, %c0_i32, %c0_i32_0 : i32, i32, i32, i32
  }
}

module attributes {stable_mosaic.version = 11 : i64} {
  func.func @_fused_layer_kernel(%arg0: i32, %arg1: i32, %arg2: memref<1x1x8x32xf32, #tpu.memory_space<vmem>>, %arg3: memref<1x32x32xbf16, #tpu.memory_space<vmem>>, %arg4: memref<1x32x32xbf16, #tpu.memory_space<vmem>>, %arg5: memref<1x32x32xbf16, #tpu.memory_space<vmem>>, %arg6: memref<1x4x8x32xbf16, #tpu.memory_space<vmem>>, %arg7: memref<1x1x32xf32, #tpu.memory_space<vmem>>, %arg8: memref<1x1x32xf32, #tpu.memory_space<vmem>>, %arg9: memref<1x1x32xf32, #tpu.memory_space<vmem>>, %arg10: memref<1x1x32xf32, #tpu.memory_space<vmem>>, %arg11: memref<1x4x4x8xbf16, #tpu.memory_space<vmem>>, %arg12: memref<1x1x32x32xbf16, #tpu.memory_space<vmem>>, %arg13: memref<1x1x1x32xf32, #tpu.memory_space<vmem>>, %arg14: memref<1x1x32x32xbf16, #tpu.memory_space<vmem>>, %arg15: memref<1x1x1x32xf32, #tpu.memory_space<vmem>>, %arg16: memref<1x1x8x32xf32, #tpu.memory_space<vmem>>) attributes {dimension_semantics = [#tpu.dimension_semantics<parallel>, #tpu.dimension_semantics<parallel>], iteration_bounds = array<i64: 2, 2>, scalar_prefetch = 0 : i64, scratch_operands = 0 : i64, tpu.core_type = #tpu.core_type<tc>, window_params = [{transform_indices = @transform_0, window_bounds = array<i64: 1, 1, 8, 32>}, {transform_indices = @transform_1, window_bounds = array<i64: 1, 32, 32>}, {transform_indices = @transform_2, window_bounds = array<i64: 1, 32, 32>}, {transform_indices = @transform_3, window_bounds = array<i64: 1, 32, 32>}, {transform_indices = @transform_4, window_bounds = array<i64: 1, 4, 8, 32>}, {transform_indices = @transform_5, window_bounds = array<i64: 1, 1, 32>}, {transform_indices = @transform_6, window_bounds = array<i64: 1, 1, 32>}, {transform_indices = @transform_7, window_bounds = array<i64: 1, 1, 32>}, {transform_indices = @transform_8, window_bounds = array<i64: 1, 1, 32>}, {transform_indices = @transform_9, window_bounds = array<i64: 1, 4, 4, 8>}, {transform_indices = @transform_10, window_bounds = array<i64: 1, 1, 32, 32>}, {transform_indices = @transform_11, window_bounds = array<i64: 1, 1, 1, 32>}, {transform_indices = @transform_12, window_bounds = array<i64: 1, 1, 32, 32>}, {transform_indices = @transform_13, window_bounds = array<i64: 1, 1, 1, 32>}, {transform_indices = @transform_14, window_bounds = array<i64: 1, 1, 8, 32>}]} {
    %c0 = arith.constant 0 : index
    %c0_0 = arith.constant 0 : index
    %c0_1 = arith.constant 0 : index
    %c0_2 = arith.constant 0 : index
    %0 = vector.load %arg2[%c0, %c0_0, %c0_1, %c0_2] : memref<1x1x8x32xf32, #tpu.memory_space<vmem>>, vector<1x1x8x32xf32>
    %1 = vector.shape_cast %0 : vector<1x1x8x32xf32> to vector<8x32xf32>
    %2 = arith.truncf %1 : vector<8x32xf32> to vector<8x32xbf16>
    %c0_3 = arith.constant 0 : index
    %c0_4 = arith.constant 0 : index
    %c0_5 = arith.constant 0 : index
    %3 = vector.load %arg3[%c0_3, %c0_4, %c0_5] : memref<1x32x32xbf16, #tpu.memory_space<vmem>>, vector<1x32x32xbf16>
    %4 = vector.shape_cast %3 : vector<1x32x32xbf16> to vector<32x32xbf16>
    %cst = arith.constant dense<0.000000e+00> : vector<8x32xf32>
    %5 = tpu.matmul %2, %4, %cst {dimension_numbers = #tpu.dot_dimension_numbers<[1], [0], [0], [1], [0, 0, 1, 1], [], []>} : vector<8x32xbf16>, vector<32x32xbf16>, vector<8x32xf32> -> vector<8x32xf32>
    %c0_6 = arith.constant 0 : index
    %c0_7 = arith.constant 0 : index
    %c0_8 = arith.constant 0 : index
    %6 = vector.load %arg7[%c0_6, %c0_7, %c0_8] : memref<1x1x32xf32, #tpu.memory_space<vmem>>, vector<1x1x32xf32>
    %7 = vector.shape_cast %6 : vector<1x1x32xf32> to vector<1x32xf32>
    %8 = vector.broadcast %7 : vector<1x32xf32> to vector<8x32xf32>
    %9 = arith.addf %5, %8 : vector<8x32xf32>
    %c0_9 = arith.constant 0 : index
    %c0_10 = arith.constant 0 : index
    %c0_11 = arith.constant 0 : index
    %10 = vector.load %arg4[%c0_9, %c0_10, %c0_11] : memref<1x32x32xbf16, #tpu.memory_space<vmem>>, vector<1x32x32xbf16>
    %11 = vector.shape_cast %10 : vector<1x32x32xbf16> to vector<32x32xbf16>
    %cst_12 = arith.constant dense<0.000000e+00> : vector<8x32xf32>
    %12 = tpu.matmul %2, %11, %cst_12 {dimension_numbers = #tpu.dot_dimension_numbers<[1], [0], [0], [1], [0, 0, 1, 1], [], []>} : vector<8x32xbf16>, vector<32x32xbf16>, vector<8x32xf32> -> vector<8x32xf32>
    %c0_13 = arith.constant 0 : index
    %c0_14 = arith.constant 0 : index
    %c0_15 = arith.constant 0 : index
    %13 = vector.load %arg8[%c0_13, %c0_14, %c0_15] : memref<1x1x32xf32, #tpu.memory_space<vmem>>, vector<1x1x32xf32>
    %14 = vector.shape_cast %13 : vector<1x1x32xf32> to vector<1x32xf32>
    %15 = vector.broadcast %14 : vector<1x32xf32> to vector<8x32xf32>
    %16 = arith.addf %12, %15 : vector<8x32xf32>
    %c0_16 = arith.constant 0 : index
    %c0_17 = arith.constant 0 : index
    %c0_18 = arith.constant 0 : index
    %17 = vector.load %arg5[%c0_16, %c0_17, %c0_18] : memref<1x32x32xbf16, #tpu.memory_space<vmem>>, vector<1x32x32xbf16>
    %18 = vector.shape_cast %17 : vector<1x32x32xbf16> to vector<32x32xbf16>
    %cst_19 = arith.constant dense<0.000000e+00> : vector<8x32xf32>
    %19 = tpu.matmul %2, %18, %cst_19 {dimension_numbers = #tpu.dot_dimension_numbers<[1], [0], [0], [1], [0, 0, 1, 1], [], []>} : vector<8x32xbf16>, vector<32x32xbf16>, vector<8x32xf32> -> vector<8x32xf32>
    %c0_20 = arith.constant 0 : index
    %c0_21 = arith.constant 0 : index
    %c0_22 = arith.constant 0 : index
    %20 = vector.load %arg9[%c0_20, %c0_21, %c0_22] : memref<1x1x32xf32, #tpu.memory_space<vmem>>, vector<1x1x32xf32>
    %21 = vector.shape_cast %20 : vector<1x1x32xf32> to vector<1x32xf32>
    %22 = vector.broadcast %21 : vector<1x32xf32> to vector<8x32xf32>
    %23 = arith.addf %19, %22 : vector<8x32xf32>
    %cst_23 = arith.constant 0.353553385 : f32
    %24 = vector.broadcast %cst_23 : f32 to vector<8x32xf32>
    %25 = arith.mulf %9, %24 : vector<8x32xf32>
    %26 = vector.extract_strided_slice %25 {offsets = [0, 0], sizes = [8, 8], strides = [1, 1]} : vector<8x32xf32> to vector<8x8xf32>
    %27 = vector.extract_strided_slice %25 {offsets = [0, 8], sizes = [8, 8], strides = [1, 1]} : vector<8x32xf32> to vector<8x8xf32>
    %28 = vector.extract_strided_slice %25 {offsets = [0, 16], sizes = [8, 8], strides = [1, 1]} : vector<8x32xf32> to vector<8x8xf32>
    %29 = vector.extract_strided_slice %25 {offsets = [0, 24], sizes = [8, 8], strides = [1, 1]} : vector<8x32xf32> to vector<8x8xf32>
    %30 = vector.shape_cast %26 : vector<8x8xf32> to vector<1x8x8xf32>
    %31 = vector.shape_cast %27 : vector<8x8xf32> to vector<1x8x8xf32>
    %32 = vector.shape_cast %28 : vector<8x8xf32> to vector<1x8x8xf32>
    %33 = vector.shape_cast %29 : vector<8x8xf32> to vector<1x8x8xf32>
    %34 = tpu.concatenate %30, %31, %32, %33 in 0 : vector<1x8x8xf32>, vector<1x8x8xf32>, vector<1x8x8xf32>, vector<1x8x8xf32> -> vector<4x8x8xf32>
    %35 = arith.truncf %34 : vector<4x8x8xf32> to vector<4x8x8xbf16>
    %36 = vector.extract_strided_slice %16 {offsets = [0, 0], sizes = [8, 8], strides = [1, 1]} : vector<8x32xf32> to vector<8x8xf32>
    %37 = vector.extract_strided_slice %16 {offsets = [0, 8], sizes = [8, 8], strides = [1, 1]} : vector<8x32xf32> to vector<8x8xf32>
    %38 = vector.extract_strided_slice %16 {offsets = [0, 16], sizes = [8, 8], strides = [1, 1]} : vector<8x32xf32> to vector<8x8xf32>
    %39 = vector.extract_strided_slice %16 {offsets = [0, 24], sizes = [8, 8], strides = [1, 1]} : vector<8x32xf32> to vector<8x8xf32>
    %40 = vector.shape_cast %36 : vector<8x8xf32> to vector<1x8x8xf32>
    %41 = vector.shape_cast %37 : vector<8x8xf32> to vector<1x8x8xf32>
    %42 = vector.shape_cast %38 : vector<8x8xf32> to vector<1x8x8xf32>
    %43 = vector.shape_cast %39 : vector<8x8xf32> to vector<1x8x8xf32>
    %44 = tpu.concatenate %40, %41, %42, %43 in 0 : vector<1x8x8xf32>, vector<1x8x8xf32>, vector<1x8x8xf32>, vector<1x8x8xf32> -> vector<4x8x8xf32>
    %45 = arith.truncf %44 : vector<4x8x8xf32> to vector<4x8x8xbf16>
    %46 = vector.extract_strided_slice %23 {offsets = [0, 0], sizes = [8, 8], strides = [1, 1]} : vector<8x32xf32> to vector<8x8xf32>
    %47 = vector.extract_strided_slice %23 {offsets = [0, 8], sizes = [8, 8], strides = [1, 1]} : vector<8x32xf32> to vector<8x8xf32>
    %48 = vector.extract_strided_slice %23 {offsets = [0, 16], sizes = [8, 8], strides = [1, 1]} : vector<8x32xf32> to vector<8x8xf32>
    %49 = vector.extract_strided_slice %23 {offsets = [0, 24], sizes = [8, 8], strides = [1, 1]} : vector<8x32xf32> to vector<8x8xf32>
    %50 = vector.shape_cast %46 : vector<8x8xf32> to vector<1x8x8xf32>
    %51 = vector.shape_cast %47 : vector<8x8xf32> to vector<1x8x8xf32>
    %52 = vector.shape_cast %48 : vector<8x8xf32> to vector<1x8x8xf32>
    %53 = vector.shape_cast %49 : vector<8x8xf32> to vector<1x8x8xf32>
    %54 = tpu.concatenate %50, %51, %52, %53 in 0 : vector<1x8x8xf32>, vector<1x8x8xf32>, vector<1x8x8xf32>, vector<1x8x8xf32> -> vector<4x8x8xf32>
    %55 = arith.truncf %54 : vector<4x8x8xf32> to vector<4x8x8xbf16>
    "tpu.trace_start"() <{level = 10 : i32, message = "hqd,hkd->hqk"}> : () -> ()
    %cst_24 = arith.constant dense<0.000000e+00> : vector<4x8x8xf32>
    %56 = tpu.matmul %35, %45, %cst_24 {dimension_numbers = #tpu.dot_dimension_numbers<[2], [2], [1], [1], [0, 0, 0, 1, 1, 1], [0], [0]>} : vector<4x8x8xbf16>, vector<4x8x8xbf16>, vector<4x8x8xf32> -> vector<4x8x8xf32>
    "tpu.trace_stop"() : () -> ()
    %c0_25 = arith.constant 0 : index
    %c0_26 = arith.constant 0 : index
    %c0_27 = arith.constant 0 : index
    %c0_28 = arith.constant 0 : index
    %57 = vector.load %arg11[%c0_25, %c0_26, %c0_27, %c0_28] : memref<1x4x4x8xbf16, #tpu.memory_space<vmem>>, vector<1x4x4x8xbf16>
    %58 = vector.shape_cast %57 : vector<1x4x4x8xbf16> to vector<4x4x8xbf16>
    "tpu.trace_start"() <{level = 10 : i32, message = "hqd,hpd->hqp"}> : () -> ()
    %cst_29 = arith.constant dense<0.000000e+00> : vector<4x8x4xf32>
    %59 = tpu.matmul %35, %58, %cst_29 {dimension_numbers = #tpu.dot_dimension_numbers<[2], [2], [1], [1], [0, 0, 0, 1, 1, 1], [0], [0]>} : vector<4x8x8xbf16>, vector<4x4x8xbf16>, vector<4x8x4xf32> -> vector<4x8x4xf32>
    "tpu.trace_stop"() : () -> ()
    %c0_i32 = arith.constant 0 : i32
    %60 = arith.cmpi eq, %arg0, %c0_i32 : i32
    %61 = arith.extui %60 : i1 to i32
    %c2_i32 = arith.constant 2 : i32
    %62 = arith.muli %c2_i32, %61 : i32
    %c1_i32 = arith.constant 1 : i32
    %63 = arith.subi %62, %c1_i32 : i32
    %64 = tpu.iota {dimensions = array<i32: 0>} : vector<8x8xi32>
    %65 = tpu.iota {dimensions = array<i32: 1>} : vector<8x8xi32>
    %66 = arith.subi %64, %65 : vector<8x8xi32>
    %67 = vector.broadcast %63 : i32 to vector<8x8xi32>
    %68 = arith.muli %67, %66 : vector<8x8xi32>
    %c0_i32_30 = arith.constant 0 : i32
    %69 = vector.broadcast %c0_i32_30 : i32 to vector<8x8xi32>
    %70 = arith.cmpi sge, %68, %69 : vector<8x8xi32>
    %c3_i32 = arith.constant 3 : i32
    %71 = vector.broadcast %c3_i32 : i32 to vector<8x8xi32>
    %72 = arith.cmpi sle, %68, %71 : vector<8x8xi32>
    %73 = arith.andi %70, %72 : vector<8x8xi1>
    %c3_i32_31 = arith.constant 3 : i32
    %74 = arith.muli %61, %c3_i32_31 : i32
    %c2_i32_32 = arith.constant 2 : i32
    %75 = arith.muli %c2_i32_32, %61 : i32
    %c1_i32_33 = arith.constant 1 : i32
    %76 = arith.subi %c1_i32_33, %75 : i32
    %77 = vector.broadcast %76 : i32 to vector<8x8xi32>
    %78 = arith.muli %77, %68 : vector<8x8xi32>
    %79 = vector.broadcast %74 : i32 to vector<8x8xi32>
    %80 = arith.addi %79, %78 : vector<8x8xi32>
    %c0_i32_34 = arith.constant 0 : i32
    %81 = vector.broadcast %c0_i32_34 : i32 to vector<8x8xi32>
    %82 = arith.cmpi eq, %80, %81 : vector<8x8xi32>
    %83 = arith.andi %73, %82 : vector<8x8xi1>
    %84 = vector.shape_cast %83 : vector<8x8xi1> to vector<1x8x8xi1>
    %85 = vector.extract_strided_slice %59 {offsets = [0, 0, 0], sizes = [4, 8, 1], strides = [1, 1, 1]} : vector<4x8x4xf32> to vector<4x8x1xf32>
    %cst_35 = arith.constant 0.000000e+00 : f32
    %86 = vector.shape_cast %84 : vector<1x8x8xi1> to vector<1x8x8xi1>
    %87 = vector.broadcast %86 : vector<1x8x8xi1> to vector<4x8x8xi1>
    %88 = vector.shape_cast %85 : vector<4x8x1xf32> to vector<4x8x1xf32>
    %89 = vector.broadcast %88 : vector<4x8x1xf32> to vector<4x8x8xf32>
    %90 = vector.broadcast %cst_35 : f32 to vector<4x8x8xf32>
    %91 = arith.select %87, %89, %90 : vector<4x8x8xi1>, vector<4x8x8xf32>
    %92 = arith.addf %56, %91 : vector<4x8x8xf32>
    %c1_i32_36 = arith.constant 1 : i32
    %93 = vector.broadcast %c1_i32_36 : i32 to vector<8x8xi32>
    %94 = arith.cmpi eq, %80, %93 : vector<8x8xi32>
    %95 = arith.andi %73, %94 : vector<8x8xi1>
    %96 = vector.shape_cast %95 : vector<8x8xi1> to vector<1x8x8xi1>
    %97 = vector.extract_strided_slice %59 {offsets = [0, 0, 1], sizes = [4, 8, 1], strides = [1, 1, 1]} : vector<4x8x4xf32> to vector<4x8x1xf32>
    %cst_37 = arith.constant 0.000000e+00 : f32
    %98 = vector.shape_cast %96 : vector<1x8x8xi1> to vector<1x8x8xi1>
    %99 = vector.broadcast %98 : vector<1x8x8xi1> to vector<4x8x8xi1>
    %100 = vector.shape_cast %97 : vector<4x8x1xf32> to vector<4x8x1xf32>
    %101 = vector.broadcast %100 : vector<4x8x1xf32> to vector<4x8x8xf32>
    %102 = vector.broadcast %cst_37 : f32 to vector<4x8x8xf32>
    %103 = arith.select %99, %101, %102 : vector<4x8x8xi1>, vector<4x8x8xf32>
    %104 = arith.addf %92, %103 : vector<4x8x8xf32>
    %c2_i32_38 = arith.constant 2 : i32
    %105 = vector.broadcast %c2_i32_38 : i32 to vector<8x8xi32>
    %106 = arith.cmpi eq, %80, %105 : vector<8x8xi32>
    %107 = arith.andi %73, %106 : vector<8x8xi1>
    %108 = vector.shape_cast %107 : vector<8x8xi1> to vector<1x8x8xi1>
    %109 = vector.extract_strided_slice %59 {offsets = [0, 0, 2], sizes = [4, 8, 1], strides = [1, 1, 1]} : vector<4x8x4xf32> to vector<4x8x1xf32>
    %cst_39 = arith.constant 0.000000e+00 : f32
    %110 = vector.shape_cast %108 : vector<1x8x8xi1> to vector<1x8x8xi1>
    %111 = vector.broadcast %110 : vector<1x8x8xi1> to vector<4x8x8xi1>
    %112 = vector.shape_cast %109 : vector<4x8x1xf32> to vector<4x8x1xf32>
    %113 = vector.broadcast %112 : vector<4x8x1xf32> to vector<4x8x8xf32>
    %114 = vector.broadcast %cst_39 : f32 to vector<4x8x8xf32>
    %115 = arith.select %111, %113, %114 : vector<4x8x8xi1>, vector<4x8x8xf32>
    %116 = arith.addf %104, %115 : vector<4x8x8xf32>
    %c3_i32_40 = arith.constant 3 : i32
    %117 = vector.broadcast %c3_i32_40 : i32 to vector<8x8xi32>
    %118 = arith.cmpi eq, %80, %117 : vector<8x8xi32>
    %119 = arith.andi %73, %118 : vector<8x8xi1>
    %120 = vector.shape_cast %119 : vector<8x8xi1> to vector<1x8x8xi1>
    %121 = vector.extract_strided_slice %59 {offsets = [0, 0, 3], sizes = [4, 8, 1], strides = [1, 1, 1]} : vector<4x8x4xf32> to vector<4x8x1xf32>
    %cst_41 = arith.constant 0.000000e+00 : f32
    %122 = vector.shape_cast %120 : vector<1x8x8xi1> to vector<1x8x8xi1>
    %123 = vector.broadcast %122 : vector<1x8x8xi1> to vector<4x8x8xi1>
    %124 = vector.shape_cast %121 : vector<4x8x1xf32> to vector<4x8x1xf32>
    %125 = vector.broadcast %124 : vector<4x8x1xf32> to vector<4x8x8xf32>
    %126 = vector.broadcast %cst_41 : f32 to vector<4x8x8xf32>
    %127 = arith.select %123, %125, %126 : vector<4x8x8xi1>, vector<4x8x8xf32>
    %128 = arith.addf %116, %127 : vector<4x8x8xf32>
    %129 = vector.shape_cast %73 : vector<8x8xi1> to vector<1x8x8xi1>
    %cst_42 = arith.constant -1.000000e+09 : f32
    %130 = vector.shape_cast %129 : vector<1x8x8xi1> to vector<1x8x8xi1>
    %131 = vector.broadcast %130 : vector<1x8x8xi1> to vector<4x8x8xi1>
    %132 = vector.broadcast %cst_42 : f32 to vector<4x8x8xf32>
    %133 = arith.select %131, %128, %132 : vector<4x8x8xi1>, vector<4x8x8xf32>
    %cst_43 = arith.constant dense<0xFF800000> : vector<4x8xf32>
    %134 = vector.multi_reduction <maximumf>, %133, %cst_43 [2] : vector<4x8x8xf32> to vector<4x8xf32>
    %135 = vector.shape_cast %134 : vector<4x8xf32> to vector<4x8x1xf32>
    %136 = vector.broadcast %135 : vector<4x8x1xf32> to vector<4x8x8xf32>
    %137 = arith.subf %133, %136 : vector<4x8x8xf32>
    %138 = math.exp %137 : vector<4x8x8xf32>
    %cst_44 = arith.constant dense<0.000000e+00> : vector<4x8xf32>
    %139 = vector.multi_reduction <add>, %138, %cst_44 [2] : vector<4x8x8xf32> to vector<4x8xf32>
    %140 = vector.shape_cast %139 : vector<4x8xf32> to vector<4x8x1xf32>
    %141 = tpu.reciprocal %140 {approx = true} : vector<4x8x1xf32> -> vector<4x8x1xf32>
    %142 = vector.broadcast %141 : vector<4x8x1xf32> to vector<4x8x8xf32>
    %143 = arith.mulf %138, %142 : vector<4x8x8xf32>
    %144 = arith.truncf %143 : vector<4x8x8xf32> to vector<4x8x8xbf16>
    "tpu.trace_start"() <{level = 10 : i32, message = "hqk,hkd->hqd"}> : () -> ()
    %cst_45 = arith.constant dense<0.000000e+00> : vector<4x8x8xf32>
    %145 = tpu.matmul %144, %55, %cst_45 {dimension_numbers = #tpu.dot_dimension_numbers<[2], [1], [1], [2], [0, 0, 0, 1, 1, 2], [0], [0]>} : vector<4x8x8xbf16>, vector<4x8x8xbf16>, vector<4x8x8xf32> -> vector<4x8x8xf32>
    "tpu.trace_stop"() : () -> ()
    %146 = arith.truncf %145 : vector<4x8x8xf32> to vector<4x8x8xbf16>
    %c0_46 = arith.constant 0 : index
    %c0_47 = arith.constant 0 : index
    %c0_48 = arith.constant 0 : index
    %c0_49 = arith.constant 0 : index
    %147 = vector.load %arg6[%c0_46, %c0_47, %c0_48, %c0_49] : memref<1x4x8x32xbf16, #tpu.memory_space<vmem>>, vector<1x4x8x32xbf16>
    %148 = vector.shape_cast %147 : vector<1x4x8x32xbf16> to vector<4x8x32xbf16>
    "tpu.trace_start"() <{level = 10 : i32, message = "hsd,hdD->hsD"}> : () -> ()
    %cst_50 = arith.constant dense<0.000000e+00> : vector<4x8x32xf32>
    %149 = tpu.matmul %146, %148, %cst_50 {dimension_numbers = #tpu.dot_dimension_numbers<[2], [1], [1], [2], [0, 0, 0, 1, 1, 2], [0], [0]>} : vector<4x8x8xbf16>, vector<4x8x32xbf16>, vector<4x8x32xf32> -> vector<4x8x32xf32>
    "tpu.trace_stop"() : () -> ()
    %cst_51 = arith.constant dense<0.000000e+00> : vector<8x32xf32>
    %150 = vector.multi_reduction <add>, %149, %cst_51 [0] : vector<4x8x32xf32> to vector<8x32xf32>
    %c0_52 = arith.constant 0 : index
    %c0_53 = arith.constant 0 : index
    %c0_54 = arith.constant 0 : index
    %151 = vector.load %arg10[%c0_52, %c0_53, %c0_54] : memref<1x1x32xf32, #tpu.memory_space<vmem>>, vector<1x1x32xf32>
    %152 = vector.shape_cast %151 : vector<1x1x32xf32> to vector<1x32xf32>
    %153 = vector.broadcast %152 : vector<1x32xf32> to vector<8x32xf32>
    %154 = arith.addf %150, %153 : vector<8x32xf32>
    %155 = arith.truncf %154 : vector<8x32xf32> to vector<8x32xbf16>
    %c0_55 = arith.constant 0 : index
    %c0_56 = arith.constant 0 : index
    %c0_57 = arith.constant 0 : index
    %c0_58 = arith.constant 0 : index
    %156 = vector.load %arg12[%c0_55, %c0_56, %c0_57, %c0_58] : memref<1x1x32x32xbf16, #tpu.memory_space<vmem>>, vector<1x1x32x32xbf16>
    %157 = vector.shape_cast %156 : vector<1x1x32x32xbf16> to vector<32x32xbf16>
    %cst_59 = arith.constant dense<0.000000e+00> : vector<8x32xf32>
    %158 = tpu.matmul %155, %157, %cst_59 {dimension_numbers = #tpu.dot_dimension_numbers<[1], [0], [0], [1], [0, 0, 1, 1], [], []>} : vector<8x32xbf16>, vector<32x32xbf16>, vector<8x32xf32> -> vector<8x32xf32>
    %c0_60 = arith.constant 0 : index
    %c0_61 = arith.constant 0 : index
    %c0_62 = arith.constant 0 : index
    %c0_63 = arith.constant 0 : index
    %159 = vector.load %arg13[%c0_60, %c0_61, %c0_62, %c0_63] : memref<1x1x1x32xf32, #tpu.memory_space<vmem>>, vector<1x1x1x32xf32>
    %160 = vector.shape_cast %159 : vector<1x1x1x32xf32> to vector<1x32xf32>
    %161 = vector.broadcast %160 : vector<1x32xf32> to vector<8x32xf32>
    %162 = arith.addf %158, %161 : vector<8x32xf32>
    %cst_64 = arith.constant 0.000000e+00 : f32
    %163 = vector.broadcast %cst_64 : f32 to vector<8x32xf32>
    %164 = arith.maximumf %162, %163 : vector<8x32xf32>
    %c0_65 = arith.constant 0 : index
    %c0_66 = arith.constant 0 : index
    %c0_67 = arith.constant 0 : index
    %c0_68 = arith.constant 0 : index
    %165 = vector.load %arg14[%c0_65, %c0_66, %c0_67, %c0_68] : memref<1x1x32x32xbf16, #tpu.memory_space<vmem>>, vector<1x1x32x32xbf16>
    %166 = vector.shape_cast %165 : vector<1x1x32x32xbf16> to vector<32x32xbf16>
    %cst_69 = arith.constant dense<0.000000e+00> : vector<8x32xf32>
    %167 = tpu.matmul %155, %166, %cst_69 {dimension_numbers = #tpu.dot_dimension_numbers<[1], [0], [0], [1], [0, 0, 1, 1], [], []>} : vector<8x32xbf16>, vector<32x32xbf16>, vector<8x32xf32> -> vector<8x32xf32>
    %c0_70 = arith.constant 0 : index
    %c0_71 = arith.constant 0 : index
    %c0_72 = arith.constant 0 : index
    %c0_73 = arith.constant 0 : index
    %168 = vector.load %arg15[%c0_70, %c0_71, %c0_72, %c0_73] : memref<1x1x1x32xf32, #tpu.memory_space<vmem>>, vector<1x1x1x32xf32>
    %169 = vector.shape_cast %168 : vector<1x1x1x32xf32> to vector<1x32xf32>
    %170 = vector.broadcast %169 : vector<1x32xf32> to vector<8x32xf32>
    %171 = arith.addf %167, %170 : vector<8x32xf32>
    %172 = arith.negf %171 : vector<8x32xf32>
    %173 = math.exp %172 : vector<8x32xf32>
    %cst_74 = arith.constant 1.000000e+00 : f32
    %174 = vector.broadcast %cst_74 : f32 to vector<8x32xf32>
    %175 = arith.addf %174, %173 : vector<8x32xf32>
    %176 = arith.divf %174, %175 : vector<8x32xf32>
    %177 = arith.mulf %176, %154 : vector<8x32xf32>
    %cst_75 = arith.constant 1.000000e+00 : f32
    %178 = vector.broadcast %cst_75 : f32 to vector<8x32xf32>
    %179 = arith.subf %178, %176 : vector<8x32xf32>
    %180 = arith.mulf %179, %164 : vector<8x32xf32>
    %181 = arith.addf %177, %180 : vector<8x32xf32>
    %182 = arith.addf %181, %1 : vector<8x32xf32>
    %c0_76 = arith.constant 0 : index
    %c0_77 = arith.constant 0 : index
    %c0_78 = arith.constant 0 : index
    %c0_79 = arith.constant 0 : index
    %183 = vector.load %arg16[%c0_76, %c0_77, %c0_78, %c0_79] : memref<1x1x8x32xf32, #tpu.memory_space<vmem>>, vector<1x1x8x32xf32>
    %184 = vector.shape_cast %183 : vector<1x1x8x32xf32> to vector<8x32xf32>
    %185 = vector.shape_cast %182 : vector<8x32xf32> to vector<1x1x8x32xf32>
    tpu.vector_store %arg16[%c0_76, %c0_77, %c0_78, %c0_79], %185 {strides = array<i32>} : memref<1x1x8x32xf32, #tpu.memory_space<vmem>>, vector<1x1x8x32xf32>,
    return
  }
  func.func @transform_0(%arg0: i32, %arg1: i32) -> (i32, i32, i32, i32) {
    %c0_i32 = arith.constant 0 : i32
    %c0_i32_0 = arith.constant 0 : i32
    %c0_i32_1 = arith.constant 0 : i32
    return %arg0, %arg1, %c0_i32, %c0_i32_0 : i32, i32, i32, i32
  }
  func.func @transform_1(%arg0: i32, %arg1: i32) -> (i32, i32, i32) {
    %c0_i32 = arith.constant 0 : i32
    %c0_i32_0 = arith.constant 0 : i32
    %c0_i32_1 = arith.constant 0 : i32
    return %arg0, %c0_i32, %c0_i32_0 : i32, i32, i32
  }
  func.func @transform_2(%arg0: i32, %arg1: i32) -> (i32, i32, i32) {
    %c0_i32 = arith.constant 0 : i32
    %c0_i32_0 = arith.constant 0 : i32
    %c0_i32_1 = arith.constant 0 : i32
    return %arg0, %c0_i32, %c0_i32_0 : i32, i32, i32
  }
  func.func @transform_3(%arg0: i32, %arg1: i32) -> (i32, i32, i32) {
    %c0_i32 = arith.constant 0 : i32
    %c0_i32_0 = arith.constant 0 : i32
    %c0_i32_1 = arith.constant 0 : i32
    return %arg0, %c0_i32, %c0_i32_0 : i32, i32, i32
  }
  func.func @transform_4(%arg0: i32, %arg1: i32) -> (i32, i32, i32, i32) {
    %c0_i32 = arith.constant 0 : i32
    %c0_i32_0 = arith.constant 0 : i32
    %c0_i32_1 = arith.constant 0 : i32
    %c0_i32_2 = arith.constant 0 : i32
    return %arg0, %c0_i32, %c0_i32_0, %c0_i32_1 : i32, i32, i32, i32
  }
  func.func @transform_5(%arg0: i32, %arg1: i32) -> (i32, i32, i32) {
    %c0_i32 = arith.constant 0 : i32
    %c0_i32_0 = arith.constant 0 : i32
    %c0_i32_1 = arith.constant 0 : i32
    return %arg0, %c0_i32, %c0_i32_0 : i32, i32, i32
  }
  func.func @transform_6(%arg0: i32, %arg1: i32) -> (i32, i32, i32) {
    %c0_i32 = arith.constant 0 : i32
    %c0_i32_0 = arith.constant 0 : i32
    %c0_i32_1 = arith.constant 0 : i32
    return %arg0, %c0_i32, %c0_i32_0 : i32, i32, i32
  }
  func.func @transform_7(%arg0: i32, %arg1: i32) -> (i32, i32, i32) {
    %c0_i32 = arith.constant 0 : i32
    %c0_i32_0 = arith.constant 0 : i32
    %c0_i32_1 = arith.constant 0 : i32
    return %arg0, %c0_i32, %c0_i32_0 : i32, i32, i32
  }
  func.func @transform_8(%arg0: i32, %arg1: i32) -> (i32, i32, i32) {
    %c0_i32 = arith.constant 0 : i32
    %c0_i32_0 = arith.constant 0 : i32
    %c0_i32_1 = arith.constant 0 : i32
    return %arg0, %c0_i32, %c0_i32_0 : i32, i32, i32
  }
  func.func @transform_9(%arg0: i32, %arg1: i32) -> (i32, i32, i32, i32) {
    %c0_i32 = arith.constant 0 : i32
    %c0_i32_0 = arith.constant 0 : i32
    %c0_i32_1 = arith.constant 0 : i32
    %c0_i32_2 = arith.constant 0 : i32
    return %arg0, %c0_i32, %c0_i32_0, %c0_i32_1 : i32, i32, i32, i32
  }
  func.func @transform_10(%arg0: i32, %arg1: i32) -> (i32, i32, i32, i32) {
    %c0_i32 = arith.constant 0 : i32
    %c0_i32_0 = arith.constant 0 : i32
    %c0_i32_1 = arith.constant 0 : i32
    %c0_i32_2 = arith.constant 0 : i32
    return %arg0, %c0_i32, %c0_i32_0, %c0_i32_1 : i32, i32, i32, i32
  }
  func.func @transform_11(%arg0: i32, %arg1: i32) -> (i32, i32, i32, i32) {
    %c0_i32 = arith.constant 0 : i32
    %c0_i32_0 = arith.constant 0 : i32
    %c0_i32_1 = arith.constant 0 : i32
    %c0_i32_2 = arith.constant 0 : i32
    return %arg0, %c0_i32, %c0_i32_0, %c0_i32_1 : i32, i32, i32, i32
  }
  func.func @transform_12(%arg0: i32, %arg1: i32) -> (i32, i32, i32, i32) {
    %c0_i32 = arith.constant 0 : i32
    %c0_i32_0 = arith.constant 0 : i32
    %c0_i32_1 = arith.constant 0 : i32
    %c0_i32_2 = arith.constant 0 : i32
    return %arg0, %c0_i32, %c0_i32_0, %c0_i32_1 : i32, i32, i32, i32
  }
  func.func @transform_13(%arg0: i32, %arg1: i32) -> (i32, i32, i32, i32) {
    %c0_i32 = arith.constant 0 : i32
    %c0_i32_0 = arith.constant 0 : i32
    %c0_i32_1 = arith.constant 0 : i32
    %c0_i32_2 = arith.constant 0 : i32
    return %arg0, %c0_i32, %c0_i32_0, %c0_i32_1 : i32, i32, i32, i32
  }
  func.func @transform_14(%arg0: i32, %arg1: i32) -> (i32, i32, i32, i32) {
    %c0_i32 = arith.constant 0 : i32
    %c0_i32_0 = arith.constant 0 : i32
    %c0_i32_1 = arith.constant 0 : i32
    return %arg0, %arg1, %c0_i32, %c0_i32_0 : i32, i32, i32, i32
  }
}

</mosaic_0001>

<bundles_post_ra>
// kernel: self_attentive_lbl_bilm_v3.3
= control target key start
LH: loop header
LB: loop body
LE: loop exit
PB: predicated region body
PF: predicated region fallthrough
CT: control target
= control target key end

     0   :  { %s2741_s29 = smov 0   ;;  %s2743_s30 = smov 0   ;;  %s3099_s0 = inlined_call_operand.vmem [shape: f32[2,2,8,32], index: 0, kind: input, shape index: {}]   ;;  %s3100_s1 = inlined_call_operand.vmem [shape: bf16[2,32,32], index: 1, kind: input, shape index: {}]   ;;  %s3101_s2 = inlined_call_operand.vmem [shape: bf16[2,32,32], index: 2, kind: input, shape index: {}]   ;;  %s3102_s3 = inlined_call_operand.vmem [shape: bf16[2,32,32], index: 3, kind: input, shape index: {}]   ;;  %s3103_s4 = inlined_call_operand.vmem [shape: bf16[2,4,8,32], index: 4, kind: input, shape index: {}]   ;;  %s3104_s5 = inlined_call_operand.vmem [shape: f32[2,1,32], index: 5, kind: input, shape index: {}]   ;;  %s3105_s6 = inlined_call_operand.vmem [shape: f32[2,1,32], index: 6, kind: input, shape index: {}]   ;;  %s3106_s7 = inlined_call_operand.vmem [shape: f32[2,1,32], index: 7, kind: input, shape index: {}]   ;;  %s3107_s8 = inlined_call_operand.vmem [shape: f32[2,1,32], index: 8, kind: input, shape index: {}]   ;;  %s3108_s9 = inlined_call_operand.vmem [shape: bf16[2,4,4,8], index: 9, kind: input, shape index: {}]   ;;  %s3109_s10 = inlined_call_operand.vmem [shape: bf16[2,1,32,32], index: 10, kind: input, shape index: {}]   ;;  %s3110_s11 = inlined_call_operand.vmem [shape: f32[2,1,1,32], index: 11, kind: input, shape index: {}]   ;;  %s3111_s12 = inlined_call_operand.vmem [shape: bf16[2,1,32,32], index: 12, kind: input, shape index: {}]   ;;  %s3112_s13 = inlined_call_operand.vmem [shape: f32[2,1,1,32], index: 13, kind: input, shape index: {}]   ;;  %s3113_s14 = inlined_call_operand.vmem [shape: f32[2,2,8,32], index: 14, kind: output, shape index: {}]  }
   0x1   :  { %s2745_s15 = smov 0   ;;  %s2747_s16 = smov 0  }
   0x2   :  { %s2749_s17 = smov 0  }
   0x3 LB: > { %3117 = sst [smem:[#allocation2_spill]] %s2647_s15  ;;  %s33_s18 = sadd.s32 1, %s2647_s15  ;;  %s2655_s17 = sphi %s2749_s17, %s24_s17   ;;  %s2651_s16 = sphi %s2747_s16, %s3136_s16   ;;  %s2647_s15 = sphi %s2745_s15, %s3135_s15   ;;  %s2643_s30 = sphi %s2743_s30, %s3134_s30   ;;  %s2639_s29 = sphi %s2741_s29, %s3133_s29  }
   0x4   : > { %3118 = sst [smem:[#allocation3_spill]] %s2651_s16  ;;  %s36_s19 = sadd.s32 1, %s2651_s16 }
   0x5   : > { %3119 = sst [smem:[#allocation4_spill]] %s2655_s17  ;;  %p34_p0 = scmp.ge.s32.totalorder %s33_s18, 2 }
   0x6   : > { %p2272_p1 = scmp.ge.s32.totalorder %s2655_s17, 1  ;;  %p549_p2 = scmp.lt.s32.totalorder %s2655_s17, 5 }
   0x7   : > { %s3138_s18 = smov (%p34_p0, %s33_s18), 0  ;;  %s3140_s19 = smov (!%p34_p0, %s36_s19), %s2651_s16 }
   0x8   : > { %3120 = sst [smem:[#allocation5_spill]] %s3138_s18  ;;  %p550_p3 = pnand %p2272_p1, %p549_p2 }
   0x9   : > { %p38_p4 = scmp.ge.s32.totalorder %s3140_s19, 2  ;;  %p654_p5 = scmp.lt.s32.totalorder (!%p550_p3), %s2643_s30, 1 }
   0xa   : > { %553 = sbr.rel (%p550_p3) target bundleno = 1643 (0x66b), region = 76  ;;  %p656_p6 = scmp.lt.s32.totalorder (!%p550_p3), %s2639_s29, 1 }
   0xb   : > { %s3142_s19 = smov (%p38_p4, %s3140_s19), 0  ;;  %s2659_s16 = smov (!%p550_p3), 104  }
   0xc   : > { %3121 = sst [smem:[#allocation6_spill]] %s3142_s19  ;;  %s2661_s19 = smov (!%p550_p3), 112  }
   0xd   : > { %p1151_p7 = scmp.eq.s32.totalorder (!%p550_p3), %s2643_s30, 0 }
   0xf   : > { %v2657_v0 = vmov 0.0   ;;  %vm2658_vm0 = vmmov 0   ;;  %s2778_s20 = scalar_select %p654_p5, %s2643_s30, 1  ;;  %vm749_vm1 = vcmask 261120   ;;  %vm966_vm2 = vcmask 64512  }
  0x10   : > { %2387 = vmatprep.subr.bf16.mxu0 %v2657_v0  ;;  %2391 = vmatprep.mubr.msk.bf16.mxu0 %vm2658_vm0, %v2657_v0  ;;  %s3144_s29 = smov (!%p656_p6, %s2639_s29), 1  ;;  %v2662_v29 = vmov 1   ;;  %v2663_v30 = vmov 0   ;;  %vm1512_vm3 = vcmask 1043456   ;;  %v2664_v61 = vmov 2  }
  0x11   : > { %2395 = vmatprep.subr.bf16.mxu1 %v2657_v0  ;;  %2399 = vmatprep.mubr.msk.bf16.mxu1 %vm2658_vm0, %v2657_v0  ;;  %s2784_s21 = sshll.u32 %s2778_s20, 4  ;;  %s2273_s22 = sshll.u32 %s2778_s20, 1  ;;  %v2665_v62 = vmov 3  }
  0x12   : > { %s666_s25 = scalar_lea.vmem %s3100_s1, %s2784_s21  ;;  %s2791_s26 = sadd.s32 %s2273_s22, %s3144_s29  ;;  %2573 = vset.pattern.permute.xlu1 %v2662_v29  ;;  %2572 = vset.pattern.permute.xlu0 %v2663_v30 }
  0x13   : > { %v2587_v1 = vld [vmem:[%s666_s25 + $0x8] sm:$0xff]   ;;  %s2274_s27 = sshll.u32 %s2791_s26, 3  ;;  %s671_s18 = scalar_lea.vmem %s3101_s2, %s2784_s21  ;;  %v2588_v2 = vld [vmem:[%s666_s25] sm:$0xff]  }
  0x14   : > { %s661_s17 = scalar_lea.vmem %s3099_s0, %s2274_s27  ;;  %2388 = vmatpush3.bf16.msra.mxu0 %v2587_v1  ;;  %v2589_v4 = vld [vmem:[%s671_s18 + $0x8] sm:$0xff]   ;;  %v2590_v6 = vld [vmem:[%s671_s18] sm:$0xff]   ;;  %s2337_s29 = sshll.u32 %s2778_s20, 3 }
  0x15   : > { %v2803_v3 = vld [vmem:[%s661_s17] sm:$0xff]  ;;  %2389 = vmatprep.subr.bf16.mxu0 %v2657_v0  ;;  %2396 = vmatpush3.bf16.msra.mxu1 %v2589_v4  ;;  %s2821_s17 = scalar_lea.vmem %s3108_s9, %s2337_s29  ;;  %s676_s22 = scalar_lea.vmem %s3102_s3, %s2784_s21 }
  0x16   : > { %v725_v5 = vpack.c.bf16 %v2803_v3, %v2803_v3  ;;  %2397 = vmatprep.subr.bf16.mxu1 %v2657_v0  ;;  %v962_v7 = vld [vmem:[%s2821_s17] sm:$0x3]  ;;  %v2591_v9 = vld [vmem:[%s676_s22 + $0x8] sm:$0xff]   ;;  %v963_v11 = vld [vmem:[%s2821_s17 + $0x2] sm:$0x3]  ;;  %s684_s25 = scalar_lea.vmem %s3104_s5, %s2778_s20  ;;  %s687_s15 = scalar_lea.vmem %s3105_s6, %s2778_s20 }
  0x17   : > { %v971_v8 = vsel %vm966_vm2, %v962_v7, 0  ;;  %v2592_v10 = vld [vmem:[%s676_s22] sm:$0xff]   ;;  %v1017_v12 = vsel %vm966_vm2, %v963_v11, 0  ;;  %s2660_s18 = smov 120   ;;  %s690_s23 = scalar_lea.vmem %s3106_s7, %s2778_s20 }
  0x18   : > { %2390 = vmatpush3.bf16.msra.mxu0 %v2588_v2  ;;  %v2291_v13 = vld [vmem:[%s684_s25] ss:$0 sm:$0xff]  ;;  %v964_v18 = vld [vmem:[%s2821_s17 + $0x4] sm:$0x3]  ;;  %v965_v35 = vld [vmem:[%s2821_s17 + $0x6] sm:$0x3]  ;;  %s711_s22 = scalar_lea.vmem %s3111_s12, %s2784_s21  ;;  %s706_s17 = scalar_lea.vmem %s3110_s11, %s2778_s20 }
  0x19   : > { %2403 = vmatprep.subr.bf16.mxu0 %v2657_v0  ;;  %2398 = vmatpush3.bf16.msra.mxu1 %v2590_v6  ;;  %v2295_v17 = vld [vmem:[%s687_s15] ss:$0 sm:$0xff]  ;;  %v1063_v24 = vsel %vm966_vm2, %v964_v18, 0  ;;  %v1109_v39 = vsel %vm966_vm2, %v965_v35, 0  ;;  %s2912_s24 = scalar_select %p1151_p7, 1, 0 }
  0x1a   : > { %2411 = vmatprep.subr.bf16.mxu1 %v2657_v0  ;;  %v2299_v51 = vld [vmem:[%s690_s23] ss:$0 sm:$0xff] }
  0x1b   : > { %2392 = vmatmul.mubr.msk.bf16.vlgmr.msra.gmra.mxu0 %vm749_vm1, %v725_v5  ;;  %s2307_s30 = sshll.u32 %s2912_s24, 1  ;;  %s1165_s29 = smul.u32 3, %s2912_s24 }
  0x1c   : > { %2407 = vmatprep.mubr.msk.bf16.mxu0 %vm2658_vm0, %v2657_v0  ;;  %2400 = vmatmul.mubr.msk.bf16.vlgmr.msra.gmra.mxu1 %vm749_vm1, %v725_v5  ;;  %s2308_s25 = sadd.s32 4294967295, %s2307_s30  ;;  %s1166_s28 = ssub.s32 1, %s2307_s30 }
  0x1d   : > { %2413 = vmatprep.mubr.msk.bf16.mxu1 %vm2658_vm0, %v2657_v0  ;;  %2412 = vmatpush3.bf16.xpose.msra.mxu1 %v971_v8  ;;  %s703_s30 = scalar_lea.vmem %s3109_s10, %s2784_s21  ;;  %s722_s24 = scalar_lea.vmem %s3113_s14, %s2274_s27 }
  0x1e   : > { %2423 = vmatprep.subr.bf16.mxu1 %v2657_v0  ;;  %2404 = vmatpush3.bf16.msra.mxu0 %v2591_v9 }
  0x1f   : > { %2405 = vmatprep.subr.bf16.mxu0 %v2657_v0 }
  0x22   : > { %2406 = vmatpush3.bf16.msra.mxu0 %v2592_v10 }
  0x23   : > { %2417 = vmatprep.subr.bf16.mxu0 %v2657_v0 }
  0x25   : > { %2408 = vmatmul.mubr.msk.bf16.vlgmr.msra.gmra.mxu0 %vm749_vm1, %v725_v5 }
  0x26   : > { %2418 = vmatpush3.bf16.xpose.msra.mxu0 %v1017_v12  ;;  %2419 = vmatprep.mubr.msk.bf16.mxu0 %vm2658_vm0, %v2657_v0 }
  0x27   : > { %2429 = vmatprep.subr.bf16.mxu0 %v2657_v0 }
  0xdb   : > { %v787_v14 = vpop.f32.mrf.mxu0 }
  0xdc   : > { %v788_v15 = vadd.f32 %v2291_v13, %v787_v14  ;;  %v850_v20 = vpop.f32.mrf.mxu1 }
  0xdd   : > { %v2393_v16 = vpop.f32.mrf.mxu0  ;;  %v851_v23 = vadd.f32 %v2295_v17, %v850_v20  ;;  %v1155_v20 = vlaneseq }
  0xde   : > { %v919_v19 = vmul.f32 0.35355338, %v788_v15  ;;  %v2401_v25 = vpop.f32.mrf.mxu1 }
  0xdf   : > { %v790_v21 = vpop.f32.mrf.mxu0  ;;  %v944_v40 = vpack.c.bf16 %v851_v23, %v851_v23  ;;  %v1156_v25 = vshrl.u32 %v1155_v20, 7 }
  0xe0   : > { %v930_v22 = vpack.c.bf16 %v919_v19, %v919_v19  ;;  %927 = vrot.lane.b32.xlu1 %v919_v19, %s2659_s16  ;;  %921 = vrot.lane.b32.xlu0 %v919_v19, %s2660_s18  ;;  %v853_v27 = vpop.f32.mrf.mxu1 }
  0xe1   : > { %v2394_v26 = vpop.f32.mrf.mxu0  ;;  %v1200_v45 = vsel %vm966_vm2, %v944_v40, 0 }
  0xe2   : > { %2414 = vmatmul.mubr.msk.bf16.vlgmr.msra.gmra.mxu1 %vm966_vm2, %v930_v22  ;;  %v2402_v28 = vpop.f32.mrf.mxu1  ;;  %v1158_v26 = vand.u32 127, %v1155_v20 }
  0xe3   : > { %2424 = vmatpush3.bf16.xpose.msra.mxu1 %v1063_v24  ;;  %2425 = vmatprep.mubr.msk.bf16.mxu1 %vm2658_vm0, %v2657_v0 }
  0xe4   : > { %924 = vrot.lane.b32.xlu0 %v919_v19, %s2661_s19  ;;  %935 = vrot.lane.b32.xlu1 %v851_v23, %s2660_s18 }
  0xe5   : > { %2435 = vmatprep.subr.bf16.mxu1 %v2657_v0  ;;  %v913_v31 = vpop.f32.mrf.mxu0 }
  0xe6   : > { %v2881_v54 = vadd.f32 %v2299_v51, %v913_v31 }
  0xe7   : > { %v2409_v32 = vpop.f32.mrf.mxu0 }
  0xe8   : > { %938 = vrot.lane.b32.xlu0 %v851_v23, %s2661_s19  ;;  %941 = vrot.lane.b32.xlu1 %v851_v23, %s2659_s16  ;;  %v958_v56 = vpack.c.bf16 %v2881_v54, %v2881_v54  ;;  %v1159_v32 = vsub.s32 %v1156_v25, %v1158_v26 }
  0xe9   : > { %v916_v33 = vpop.f32.mrf.mxu0 }
  0xea   : > { %v1514_v57 = vsel %vm1512_vm3, %v958_v56, 0  ;;  %v1160_v33 = vstv %s2308_s25 }
  0xeb   : > { %v2410_v34 = vpop.f32.mrf.mxu0  ;;  %v1161_v35 = vmul.u32 %v1160_v33, %v1159_v32 }
  0xed   : > { %vm1162_vm4 = vcmp.ge.s32.totalorder %v1161_v35, 0  ;;  %vm1163_vm5 = vcmp.le.s32.totalorder %v1161_v35, 3 }
  0xee   : > { %vm2922_vm6 = vmand %vm1162_vm4, %vm1163_vm5 }
 0x152   : > { %v928_v36 = vpop.permute.xlu1 %927  ;;  %v922_v37 = vpop.permute.xlu0 %921 }
 0x153   : > { %v931_v38 = vpack.c.bf16 %v922_v37, %v922_v37  ;;  %v933_v47 = vpack.c.bf16 %v928_v36, %v928_v36  ;;  %v1167_v36 = vstv %s1166_s28  ;;  %s693_s28 = scalar_lea.vmem %s3107_s8, %s2778_s20 }
 0x154   : > { %v1168_v37 = vmul.u32 %v1167_v36, %v1161_v35 }
 0x155   : > { %2420 = vmatmul.mubr.msk.bf16.vlgmr.msra.gmra.mxu0 %vm966_vm2, %v931_v38 }
 0x156   : > { %2430 = vmatpush3.bf16.xpose.msra.mxu0 %v1109_v39  ;;  %v925_v41 = vpop.permute.xlu0 %924  ;;  %v936_v42 = vpop.permute.xlu1 %935  ;;  %2431 = vmatprep.mubr.msk.bf16.mxu0 %vm2658_vm0, %v2657_v0 }
 0x157   : > { %v932_v43 = vpack.c.bf16 %v925_v41, %v925_v41  ;;  %v945_v44 = vpack.c.bf16 %v936_v42, %v936_v42  ;;  %2441 = vmatprep.subr.bf16.mxu0 %v2657_v0 }
 0x159   : > { %2426 = vmatmul.mubr.msk.bf16.vlgmr.msra.gmra.mxu1 %vm966_vm2, %v932_v43  ;;  %v1243_v48 = vsel %vm966_vm2, %v945_v44, 0 }
 0x15a   : > { %2436 = vmatpush3.bf16.xpose.msra.mxu1 %v1200_v45  ;;  %v939_v46 = vpop.permute.xlu0 %938  ;;  %2437 = vmatprep.mubr.msk.bf16.mxu1 %vm2658_vm0, %v2657_v0  ;;  %v942_v50 = vpop.permute.xlu1 %941 }
 0x15b   : > { %v946_v49 = vpack.c.bf16 %v939_v46, %v939_v46  ;;  %2447 = vmatprep.subr.bf16.mxu1 %v2657_v0  ;;  %v947_v53 = vpack.c.bf16 %v942_v50, %v942_v50 }
 0x15d   : > { %2432 = vmatmul.mubr.msk.bf16.vlgmr.msra.gmra.mxu0 %vm966_vm2, %v933_v47  ;;  %v1286_v52 = vsel %vm966_vm2, %v946_v49, 0  ;;  %v1329_v55 = vsel %vm966_vm2, %v947_v53, 0 }
 0x15e   : > { %2442 = vmatpush3.bf16.xpose.msra.mxu0 %v1243_v48  ;;  %2443 = vmatprep.mubr.msk.bf16.mxu0 %vm2658_vm0, %v2657_v0 }
 0x15f   : > { %2453 = vmatprep.subr.bf16.mxu0 %v2657_v0 }
 0x161   : > { %2438 = vmatmul.mubr.msk.bf16.vlgmr.msra.gmra.mxu1 %vm966_vm2, %v930_v22 }
 0x162   : > { %2448 = vmatpush3.bf16.xpose.msra.mxu1 %v1286_v52  ;;  %2449 = vmatprep.mubr.msk.bf16.mxu1 %vm2658_vm0, %v2657_v0 }
 0x163   : > { %2459 = vmatprep.subr.bf16.mxu1 %v2657_v0 }
 0x165   : > { %2444 = vmatmul.mubr.msk.bf16.vlgmr.msra.gmra.mxu0 %vm966_vm2, %v931_v38  ;;  %v1169_v38 = vstv %s1165_s29 }
 0x166   : > { %2454 = vmatpush3.bf16.xpose.msra.mxu0 %v1329_v55  ;;  %2455 = vmatprep.mubr.msk.bf16.mxu0 %vm2658_vm0, %v2657_v0  ;;  %v1170_v39 = vadd.s32 %v1169_v38, %v1168_v37 }
 0x167   : > { %2465 = vmatprep.subr.bf16.mxu0 %v2657_v0 }
 0x168   : > { %vm1171_vm7 = vcmp.eq.s32.totalorder %v1170_v39, 0  ;;  %vm1371_vm9 = vcmp.eq.s32.totalorder %v1170_v39, 1  ;;  %vm1399_vm10 = vcmp.eq.s32.totalorder %v1170_v39, 2  ;;  %vm1427_vm13 = vcmp.eq.s32.totalorder %v1170_v39, 3 }
 0x169   : > { %2450 = vmatmul.mubr.msk.bf16.vlgmr.msra.gmra.mxu1 %vm966_vm2, %v932_v43  ;;  %vm2928_vm8 = vmand %vm2922_vm6, %vm1171_vm7 }
 0x16a   : > { %2460 = vmatpush3.bf16.msra.mxu1 %v1514_v57  ;;  %2461 = vmatprep.mubr.msk.bf16.mxu1 %vm2658_vm0, %v2657_v0  ;;  %vm2936_vm11 = vmand %vm2922_vm6, %vm1371_vm9 }
 0x16b   : > { %2471 = vmatprep.subr.bf16.mxu1 %v2657_v0  ;;  %vm2942_vm12 = vmand %vm2922_vm6, %vm1399_vm10 }
 0x16c   : > { %vm2952_vm14 = vmand %vm2922_vm6, %vm1427_vm13 }
 0x16d   : > { %2456 = vmatmul.mubr.msk.bf16.vlgmr.msra.gmra.mxu0 %vm966_vm2, %v933_v47 }
 0x16e   : > { %2467 = vmatprep.mubr.msk.bf16.mxu0 %vm2658_vm0, %v2657_v0 }
 0x1a2   : > { %v1007_v58 = vpop.f32.mrf.mxu1 }
 0x1a3   : > { %1376 = vperm.xlu1 %2573, %v1007_v58   ;;  %1177 = vperm.xlu0 %2572, %v1007_v58  }
 0x1a4   : > { %v2415_v59 = vpop.f32.mrf.mxu1 }
 0x1a6   : > { %v1010_v60 = vpop.f32.mrf.mxu1 }
 0x1a7   : > { %2574 = vset.pattern.permute.xlu1 %v2664_v61  ;;  %2575 = vset.pattern.permute.xlu0 %v2665_v62 }
 0x1a8   : > { %1404 = vperm.xlu1 %2574, %v1007_v58   ;;  %1432 = vperm.xlu0 %2575, %v1007_v58   ;;  %v2416_v63 = vpop.f32.mrf.mxu1 }
 0x1ac   : > { %2576 = vset.pattern.permute.xlu1 %v2663_v30  ;;  %2577 = vset.pattern.permute.xlu0 %v2662_v29 }
 0x215   : > { %v1053_v1 = vpop.f32.mrf.mxu0 }
 0x216   : > { %1380 = vperm.xlu0 %2577, %v1053_v1   ;;  %1182 = vperm.xlu1 %2576, %v1053_v1  }
 0x217   : > { %v2421_v2 = vpop.f32.mrf.mxu0 }
 0x219   : > { %v1056_v4 = vpop.f32.mrf.mxu0  ;;  %v1099_v5 = vpop.f32.mrf.mxu1 }
 0x21a   : > { %2582 = vset.pattern.permute.xlu0 %v2664_v61  ;;  %2578 = vset.pattern.permute.xlu1 %v2664_v61 }
 0x21b   : > { %v2427_v6 = vpop.f32.mrf.mxu1  ;;  %1412 = vperm.xlu0 %2582, %v1099_v5   ;;  %1408 = vperm.xlu1 %2578, %v1053_v1   ;;  %v2422_v7 = vpop.f32.mrf.mxu0 }
 0x21d   : > { %v1102_v8 = vpop.f32.mrf.mxu1  ;;  %v1145_v9 = vpop.f32.mrf.mxu0 }
 0x21e   : > { %v1377_v41 = vpop.permute.xlu1 %1376  ;;  %v1178_v43 = vpop.permute.xlu0 %1177 }
 0x21f   : > { %v2428_v10 = vpop.f32.mrf.mxu1  ;;  %2583 = vset.pattern.permute.xlu0 %v2663_v30  ;;  %2579 = vset.pattern.permute.xlu1 %v2663_v30  ;;  %v2433_v11 = vpop.f32.mrf.mxu0  ;;  %v1195_v44 = vsel %vm2928_vm8, %v1178_v43, 0.0  ;;  %v1391_v49 = vsel %vm2936_vm11, %v1377_v41, 0.0 }
 0x220   : > { %1187 = vperm.xlu1 %2579, %v1099_v5   ;;  %1192 = vperm.xlu0 %2583, %v1145_v9  }
 0x221   : > { %v1148_v12 = vpop.f32.mrf.mxu0  ;;  %v1236_v13 = vpop.f32.mrf.mxu1 }
 0x222   : > { %v1237_v46 = vadd.f32 %v1236_v13, %v1195_v44 }
 0x223   : > { %v2434_v14 = vpop.f32.mrf.mxu0  ;;  %v2439_v15 = vpop.f32.mrf.mxu1 }
 0x224   : > { %2580 = vset.pattern.permute.xlu1 %v2665_v62  ;;  %2586 = vset.pattern.permute.xlu0 %v2665_v62  ;;  %v1405_v48 = vpop.permute.xlu1 %1404  ;;  %v1395_v50 = vadd.f32 %v1391_v49, %v1237_v46  ;;  %v1433_v55 = vpop.permute.xlu0 %1432 }
 0x225   : > { %1436 = vperm.xlu1 %2580, %v1053_v1   ;;  %1444 = vperm.xlu0 %2586, %v1145_v9   ;;  %v1239_v16 = vpop.f32.mrf.mxu1  ;;  %v2910_v17 = vpop.f32.mrf.mxu0  ;;  %v1419_v51 = vsel %vm2942_vm12, %v1405_v48, 0.0  ;;  %v1447_v56 = vsel %vm2952_vm14, %v1433_v55, 0.0 }
 0x226   : > { %v1423_v52 = vadd.f32 %v1419_v51, %v1395_v50 }
 0x227   : > { %v2440_v18 = vpop.f32.mrf.mxu1  ;;  %v2445_v19 = vpop.f32.mrf.mxu0 }
 0x228   : > { %v1451_v57 = vadd.f32 %v1447_v56, %v1423_v52 }
 0x229   : > { %2581 = vset.pattern.permute.xlu1 %v2662_v29  ;;  %v2915_v21 = vpop.f32.mrf.mxu1  ;;  %v1282_v22 = vpop.f32.mrf.mxu0 }
 0x22a   : > { %1384 = vperm.xlu1 %2581, %v1099_v5   ;;  %v1457_v58 = vsel %vm2922_vm6, %v1451_v57, -1e+09 }
 0x22b   : > { %v2446_v23 = vpop.f32.mrf.mxu0  ;;  %v2451_v24 = vpop.f32.mrf.mxu1  ;;  %v1461_v59 = vsel %vm966_vm2, %v1457_v58, -inf }
 0x22d   : > { %v1325_v27 = vpop.f32.mrf.mxu1  ;;  %v2918_v28 = vpop.f32.mrf.mxu0 }
 0x22e   : > { %1388 = vperm.xlu1 %2581, %v1145_v9  }
 0x22f   : > { %v2452_v30 = vpop.f32.mrf.mxu1  ;;  %v2457_v31 = vpop.f32.mrf.mxu0 }
 0x231   : > { %v1368_v29 = vpop.f32.mrf.mxu0 }
 0x232   : > { %2584 = vset.pattern.permute.xlu1 %v2664_v61 }
 0x233   : > { %1416 = vperm.xlu1 %2584, %v1145_v9   ;;  %v2458_v34 = vpop.f32.mrf.mxu0 }
 0x237   : > { %2585 = vset.pattern.permute.xlu1 %v2665_v62 }
 0x238   : > { %1440 = vperm.xlu1 %2585, %v1099_v5  }
 0x25c   : > { %1462 = vmax.xlane.f32.xlu1 %v1461_v59 }
 0x291   : > { %v1183_v60 = vpop.permute.xlu1 %1182  ;;  %v1381_v63 = vpop.permute.xlu0 %1380 }
 0x292   : > { %v1196_v61 = vsel %vm2928_vm8, %v1183_v60, 0.0  ;;  %v1392_v2 = vsel %vm2936_vm11, %v1381_v63, 0.0 }
 0x293   : > { %v1280_v1 = vadd.f32 %v2910_v17, %v1196_v61 }
 0x295   : > { %v1396_v5 = vadd.f32 %v1392_v2, %v1280_v1 }
 0x296   : > { %v1409_v62 = vpop.permute.xlu1 %1408  ;;  %v1413_v7 = vpop.permute.xlu0 %1412 }
 0x297   : > { %v1420_v6 = vsel %vm2942_vm12, %v1409_v62, 0.0  ;;  %v1421_v33 = vsel %vm2942_vm12, %v1413_v7, 0.0 }
 0x298   : > { %v1424_v8 = vadd.f32 %v1420_v6, %v1396_v5 }
 0x29b   : > { %v1188_v4 = vpop.permute.xlu1 %1187  ;;  %v1193_v15 = vpop.permute.xlu0 %1192 }
 0x29c   : > { %v1198_v16 = vsel %vm2928_vm8, %v1193_v15, 0.0  ;;  %v1197_v18 = vsel %vm2928_vm8, %v1188_v4, 0.0 }
 0x29d   : > { %v1366_v20 = vadd.f32 %v2918_v28, %v1198_v16  ;;  %v1323_v23 = vadd.f32 %v2915_v21, %v1197_v18 }
 0x2a0   : > { %v1437_v9 = vpop.permute.xlu1 %1436  ;;  %v1445_v24 = vpop.permute.xlu0 %1444 }
 0x2a1   : > { %v1448_v10 = vsel %vm2952_vm14, %v1437_v9, 0.0  ;;  %v1450_v32 = vsel %vm2952_vm14, %v1445_v24, 0.0 }
 0x2a2   : > { %v1452_v11 = vadd.f32 %v1448_v10, %v1424_v8 }
 0x2a4   : > { %v1458_v12 = vsel %vm2922_vm6, %v1452_v11, -1e+09 }
 0x2a5   : > { %v1385_v13 = vpop.permute.xlu1 %1384  ;;  %v1464_v14 = vsel %vm966_vm2, %v1458_v12, -inf }
 0x2a6   : > { %1465 = vmax.xlane.f32.xlu0 %v1464_v14  ;;  %v1393_v22 = vsel %vm2936_vm11, %v1385_v13, 0.0 }
 0x2a7   : > { %v1397_v27 = vadd.f32 %v1393_v22, %v1323_v23 }
 0x2a9   : > { %v1389_v17 = vpop.permute.xlu1 %1388  ;;  %v1425_v29 = vadd.f32 %v1421_v33, %v1397_v27 }
 0x2aa   : > { %v1394_v19 = vsel %vm2936_vm11, %v1389_v17, 0.0 }
 0x2ab   : > { %v1398_v25 = vadd.f32 %v1394_v19, %v1366_v20 }
 0x2ae   : > { %v1417_v26 = vpop.permute.xlu1 %1416 }
 0x2af   : > { %v1422_v30 = vsel %vm2942_vm12, %v1417_v26, 0.0 }
 0x2b0   : > { %v1426_v31 = vadd.f32 %v1422_v30, %v1398_v25 }
 0x2b2   : > { %v1454_v28 = vadd.f32 %v1450_v32, %v1426_v31 }
 0x2b3   : > { %v1441_v34 = vpop.permute.xlu1 %1440 }
 0x2b4   : > { %v1449_v21 = vsel %vm2952_vm14, %v1441_v34, 0.0  ;;  %v1460_v35 = vsel %vm2922_vm6, %v1454_v28, -1e+09 }
 0x2b5   : > { %v1453_v36 = vadd.f32 %v1449_v21, %v1425_v29  ;;  %v1470_v37 = vsel %vm966_vm2, %v1460_v35, -inf }
 0x2b6   : > { %1471 = vmax.xlane.f32.xlu0 %v1470_v37 }
 0x2b7   : > { %v1459_v38 = vsel %vm2922_vm6, %v1453_v36, -1e+09 }
 0x2b8   : > { %v1467_v39 = vsel %vm966_vm2, %v1459_v38, -inf }
 0x2b9   : > { %1468 = vmax.xlane.f32.xlu1 %v1467_v39 }
 0x2ca   : > { %949 = vrot.lane.b32.xlu1 %v2881_v54, %s2660_s18  ;;  %s681_s18 = scalar_lea.vmem %s3103_s4, %s2784_s21 }
 0x2cb   : > { %v1698_v22 = vld [vmem:[%s681_s18] sm:$0xf]  ;;  %v1699_v26 = vld [vmem:[%s681_s18 + $0x4] sm:$0xf]  ;;  %v1700_v30 = vld [vmem:[%s681_s18 + $0x8] sm:$0xf] }
 0x2cc   : > { %v1706_v25 = vsel %vm1512_vm3, %v1698_v22, 0  ;;  %v1752_v27 = vsel %vm1512_vm3, %v1699_v26, 0  ;;  %v1798_v33 = vsel %vm1512_vm3, %v1700_v30, 0  ;;  %v1701_v21 = vld [vmem:[%s681_s18 + $0xc] sm:$0xf] }
 0x2cd   : > { %v1844_v37 = vsel %vm1512_vm3, %v1701_v21, 0 }
 0x2e5   : > { %v1463_v41 = vpop.xlane.xlu1 %1462 }
 0x2e6   : > { %v1473_v42 = vsub.f32 %v1457_v58, %v1463_v41 }
 0x2e8   : > { %v1477_v43 = vmul.f32 1.442695, %v1473_v42 }
 0x2ea   : > { %2597 = vpow2.f32 %v1477_v43 }
 0x2f7   : > { %v2598_v44 = vpop.eup %2597 }
 0x2f8   : > { %v1485_v45 = vsel %vm966_vm2, %v2598_v44, 0.0 }
 0x2f9   : > { %1486 = vadd.xlane.f32.xlu1 %v1485_v45 }
 0x32f   : > { %v1466_v46 = vpop.xlane.xlu0 %1465 }
 0x330   : > { %v1474_v47 = vsub.f32 %v1458_v12, %v1466_v46 }
 0x332   : > { %v1479_v48 = vmul.f32 1.442695, %v1474_v47 }
 0x334   : > { %2599 = vpow2.f32 %v1479_v48 }
 0x33f   : > { %v1472_v40 = vpop.xlane.xlu0 %1471 }
 0x340   : > { %v1476_v49 = vsub.f32 %v1460_v35, %v1472_v40 }
 0x341   : > { %v2600_v50 = vpop.eup %2599 }
 0x342   : > { %v1483_v51 = vmul.f32 1.442695, %v1476_v49  ;;  %v1469_v52 = vpop.xlane.xlu1 %1468  ;;  %v1488_v53 = vsel %vm966_vm2, %v2600_v50, 0.0 }
 0x343   : > { %v1475_v55 = vsub.f32 %v1459_v38, %v1469_v52  ;;  %1489 = vadd.xlane.f32.xlu0 %v1488_v53  ;;  %v2594_v52 = vld [vmem:[%s703_s30 + $0x8] sm:$0xff]   ;;  %v2595_v53 = vld [vmem:[%s711_s22] sm:$0xff]  }
 0x344   : > { %2601 = vpow2.f32 %v1483_v51  ;;  %v2593_v51 = vld [vmem:[%s711_s22 + $0x8] sm:$0xff]  }
 0x345   : > { %v1481_v56 = vmul.f32 1.442695, %v1475_v55  ;;  %v2596_v55 = vld [vmem:[%s703_s30] sm:$0xff]  }
 0x346   : > { %v950_v57 = vpop.permute.xlu1 %949 }
 0x347   : > { %2603 = vpow2.f32 %v1481_v56  ;;  %v959_v58 = vpack.c.bf16 %v950_v57, %v950_v57 }
 0x349   : > { %v1560_v59 = vsel %vm1512_vm3, %v959_v58, 0 }
 0x34a   : > { %2466 = vmatpush3.bf16.msra.mxu0 %v1560_v59 }
 0x34b   : > { %2477 = vmatprep.subr.bf16.mxu0 %v2657_v0 }
 0x351   : > { %v2602_v60 = vpop.eup %2601 }
 0x352   : > { %v1494_v61 = vsel %vm966_vm2, %v2602_v60, 0.0 }
 0x353   : > { %1495 = vadd.xlane.f32.xlu0 %v1494_v61 }
 0x354   : > { %v2604_v62 = vpop.eup %2603 }
 0x355   : > { %v1491_v63 = vsel %vm966_vm2, %v2604_v62, 0.0 }
 0x356   : > { %1492 = vadd.xlane.f32.xlu1 %v1491_v63 }
 0x367   : > { %955 = vrot.lane.b32.xlu1 %v2881_v54, %s2659_s16  ;;  %s714_s16 = scalar_lea.vmem %s3112_s13, %s2778_s20 }
 0x369   : > { %952 = vrot.lane.b32.xlu0 %v2881_v54, %s2661_s19 }
 0x382   : > { %v1487_v1 = vpop.xlane.xlu1 %1486 }
 0x383   : > { %2605 = vrcp.f32 %v1487_v1 }
 0x390   : > { %v2606_v2 = vpop.eup %2605 }
 0x391   : > { %v1501_v4 = vmul.f32 %v2606_v2, %v2598_v44 }
 0x393   : > { %v1505_v5 = vpack.c.bf16 %v1501_v4, %v1501_v4 }
 0x395   : > { %2462 = vmatmul.mubr.msk.bf16.vlgmr.msra.gmra.mxu1 %vm966_vm2, %v1505_v5 }
 0x396   : > { %2473 = vmatprep.mubr.msk.bf16.mxu1 %vm2658_vm0, %v2657_v0 }
 0x3cc   : > { %v1490_v6 = vpop.xlane.xlu0 %1489 }
 0x3cd   : > { %2607 = vrcp.f32 %v1490_v6 }
 0x3da   : > { %v2608_v7 = vpop.eup %2607 }
 0x3db   : > { %v1502_v8 = vmul.f32 %v2608_v7, %v2600_v50 }
 0x3dc   : > { %v1496_v9 = vpop.xlane.xlu0 %1495 }
 0x3dd   : > { %2609 = vrcp.f32 %v1496_v9  ;;  %v1506_v10 = vpack.c.bf16 %v1502_v8, %v1502_v8 }
 0x3df   : > { %v1493_v11 = vpop.xlane.xlu1 %1492  ;;  %2468 = vmatmul.mubr.msk.bf16.vlgmr.msra.gmra.mxu0 %vm966_vm2, %v1506_v10 }
 0x3e0   : > { %2611 = vrcp.f32 %v1493_v11  ;;  %v953_v54 = vpop.permute.xlu0 %952  ;;  %2479 = vmatprep.mubr.msk.bf16.mxu0 %vm2658_vm0, %v2657_v0 }
 0x3e1   : > { %v960_v12 = vpack.c.bf16 %v953_v54, %v953_v54  ;;  %v2321_v54 = vld [vmem:[%s693_s28] ss:$0 sm:$0xff] }
 0x3e3   : > { %v1606_v13 = vsel %vm1512_vm3, %v960_v12, 0  ;;  %v956_v14 = vpop.permute.xlu1 %955 }
 0x3e4   : > { %v961_v15 = vpack.c.bf16 %v956_v14, %v956_v14  ;;  %2472 = vmatpush3.bf16.msra.mxu1 %v1606_v13 }
 0x3e5   : > { %2483 = vmatprep.subr.bf16.mxu1 %v2657_v0 }
 0x3e6   : > { %v1652_v16 = vsel %vm1512_vm3, %v961_v15, 0 }
 0x3e7   : > { %2478 = vmatpush3.bf16.msra.mxu0 %v1652_v16 }
 0x3e8   : > { %2489 = vmatprep.subr.bf16.mxu0 %v2657_v0 }
 0x3ea   : > { %v2610_v17 = vpop.eup %2609 }
 0x3eb   : > { %v1504_v18 = vmul.f32 %v2610_v17, %v2602_v60 }
 0x3ed   : > { %v2612_v19 = vpop.eup %2611  ;;  %v1508_v20 = vpack.c.bf16 %v1504_v18, %v1504_v18  ;;  %v2326_v18 = vld [vmem:[%s714_s16] ss:$0 sm:$0xff] }
 0x3ee   : > { %v1503_v23 = vmul.f32 %v2612_v19, %v2604_v62 }
 0x3ef   : > { %2480 = vmatmul.mubr.msk.bf16.vlgmr.msra.gmra.mxu0 %vm966_vm2, %v1508_v20 }
 0x3f0   : > { %v1507_v24 = vpack.c.bf16 %v1503_v23, %v1503_v23  ;;  %2491 = vmatprep.mubr.msk.bf16.mxu0 %vm2658_vm0, %v2657_v0  ;;  %2490 = vmatpush3.bf16.msra.mxu0 %v1752_v27 }
 0x3f1   : > { %2501 = vmatprep.subr.bf16.mxu0 %v2657_v0 }
 0x3f2   : > { %2474 = vmatmul.mubr.msk.bf16.vlgmr.msra.gmra.mxu1 %vm966_vm2, %v1507_v24 }
 0x3f3   : > { %2484 = vmatpush3.bf16.msra.mxu1 %v1706_v25  ;;  %2485 = vmatprep.mubr.msk.bf16.mxu1 %vm2658_vm0, %v2657_v0 }
 0x3f4   : > { %2495 = vmatprep.subr.bf16.mxu1 %v2657_v0 }
 0x455   : > { %v1550_v31 = vpop.f32.mrf.mxu1 }
 0x456   : > { %v1694_v32 = vpack.c.bf16 %v1550_v31, %v1550_v31 }
 0x457   : > { %v2463_v28 = vpop.f32.mrf.mxu1 }
 0x458   : > { %2486 = vmatmul.mubr.msk.bf16.vlgmr.msra.gmra.mxu1 %vm966_vm2, %v1694_v32  ;;  %v2322_v28 = vld [vmem:[%s706_s17] ss:$0 sm:$0xff] }
 0x459   : > { %v1553_v29 = vpop.f32.mrf.mxu1  ;;  %2496 = vmatpush3.bf16.msra.mxu1 %v1798_v33  ;;  %2497 = vmatprep.mubr.msk.bf16.mxu1 %vm2658_vm0, %v2657_v0 }
 0x45a   : > { %2507 = vmatprep.subr.bf16.mxu1 %v2657_v0 }
 0x45b   : > { %v2464_v34 = vpop.f32.mrf.mxu1 }
 0x49f   : > { %v1596_v35 = vpop.f32.mrf.mxu0 }
 0x4a0   : > { %v1695_v36 = vpack.c.bf16 %v1596_v35, %v1596_v35 }
 0x4a1   : > { %v2469_v38 = vpop.f32.mrf.mxu0 }
 0x4a2   : > { %2492 = vmatmul.mubr.msk.bf16.vlgmr.msra.gmra.mxu0 %vm966_vm2, %v1695_v36 }
 0x4a3   : > { %v1599_v39 = vpop.f32.mrf.mxu0  ;;  %2502 = vmatpush3.bf16.msra.mxu0 %v1844_v37  ;;  %2503 = vmatprep.mubr.msk.bf16.mxu0 %vm2658_vm0, %v2657_v0 }
 0x4a4   : > { %2515 = vmatprep.subr.bf16.mxu0 %v2657_v0 }
 0x4a5   : > { %v2470_v41 = vpop.f32.mrf.mxu0 }
 0x4af   : > { %v1688_v42 = vpop.f32.mrf.mxu0 }
 0x4b0   : > { %v1697_v43 = vpack.c.bf16 %v1688_v42, %v1688_v42 }
 0x4b1   : > { %v2481_v44 = vpop.f32.mrf.mxu0 }
 0x4b2   : > { %v1642_v45 = vpop.f32.mrf.mxu1  ;;  %2504 = vmatmul.mubr.msk.bf16.vlgmr.msra.gmra.mxu0 %vm966_vm2, %v1697_v43 }
 0x4b3   : > { %v1696_v46 = vpack.c.bf16 %v1642_v45, %v1642_v45  ;;  %v1691_v47 = vpop.f32.mrf.mxu0  ;;  %2519 = vmatprep.mubr.msk.bf16.mxu0 %vm2658_vm0, %v2657_v0  ;;  %2516 = vmatpush3.bf16.msra.mxu0 %v2593_v51 }
 0x4b4   : > { %v2475_v48 = vpop.f32.mrf.mxu1  ;;  %2517 = vmatprep.subr.bf16.mxu0 %v2657_v0 }
 0x4b5   : > { %v2482_v40 = vpop.f32.mrf.mxu0  ;;  %2498 = vmatmul.mubr.msk.bf16.vlgmr.msra.gmra.mxu1 %vm966_vm2, %v1696_v46 }
 0x4b6   : > { %v1645_v49 = vpop.f32.mrf.mxu1  ;;  %2511 = vmatprep.mubr.msk.bf16.mxu1 %vm2658_vm0, %v2657_v0  ;;  %2508 = vmatpush3.bf16.msra.mxu1 %v2594_v52 }
 0x4b7   : > { %2509 = vmatprep.subr.bf16.mxu1 %v2657_v0  ;;  %2518 = vmatpush3.bf16.msra.mxu0 %v2595_v53 }
 0x4b8   : > { %v2476_v50 = vpop.f32.mrf.mxu1 }
 0x4ba   : > { %2510 = vmatpush3.bf16.msra.mxu1 %v2596_v55 }
 0x518   : > { %v1742_v56 = vpop.f32.mrf.mxu1 }
 0x519   : > { %v1886_v4 = vsel %vm749_vm1, %v1742_v56, 0.0 }
 0x51a   : > { %v2487_v57 = vpop.f32.mrf.mxu1 }
 0x51c   : > { %v1745_v58 = vpop.f32.mrf.mxu1 }
 0x51e   : > { %v2488_v59 = vpop.f32.mrf.mxu1 }
 0x562   : > { %v1788_v60 = vpop.f32.mrf.mxu0 }
 0x563   : > { %v1887_v1 = vsel %vm749_vm1, %v1788_v60, 0.0 }
 0x564   : > { %v2493_v61 = vpop.f32.mrf.mxu0  ;;  %v1888_v0 = vadd.f32 %v1887_v1, %v1886_v4 }
 0x566   : > { %v1791_v62 = vpop.f32.mrf.mxu0 }
 0x568   : > { %v2494_v63 = vpop.f32.mrf.mxu0 }
 0x572   : > { %v1880_v2 = vpop.f32.mrf.mxu0 }
 0x573   : > { %v1891_v11 = vsel %vm749_vm1, %v1880_v2, 0.0 }
 0x574   : > { %v2505_v5 = vpop.f32.mrf.mxu0 }
 0x575   : > { %v1834_v6 = vpop.f32.mrf.mxu1 }
 0x576   : > { %v1889_v7 = vsel %vm749_vm1, %v1834_v6, 0.0  ;;  %v1883_v8 = vpop.f32.mrf.mxu0 }
 0x577   : > { %v1890_v9 = vadd.f32 %v1889_v7, %v1888_v0  ;;  %v2499_v10 = vpop.f32.mrf.mxu1 }
 0x578   : > { %v2506_v12 = vpop.f32.mrf.mxu0 }
 0x579   : > { %v1892_v13 = vadd.f32 %v1891_v11, %v1890_v9  ;;  %v1837_v14 = vpop.f32.mrf.mxu1 }
 0x57b   : > { %v1900_v15 = vadd.f32 %v2321_v54, %v1892_v13  ;;  %v2500_v16 = vpop.f32.mrf.mxu1 }
 0x57d   : > { %v1901_v17 = vpack.c.bf16 %v1900_v15, %v1900_v15 }
 0x57f   : > { %2512 = vmatmul.mubr.msk.bf16.vlgmr.msra.gmra.mxu1 %vm749_vm1, %v1901_v17  ;;  %2520 = vmatmul.mubr.msk.bf16.vlgmr.msra.gmra.mxu0 %vm749_vm1, %v1901_v17 }
 0x63f   : > { %v1962_v19 = vpop.f32.mrf.mxu1  ;;  %v2026_v20 = vpop.f32.mrf.mxu0 }
 0x640   : > { %v2027_v22 = vadd.f32 %v2326_v18, %v2026_v20  ;;  %v1963_v29 = vadd.f32 %v2322_v28, %v1962_v19 }
 0x641   : > { %v2513_v23 = vpop.f32.mrf.mxu1  ;;  %v2521_v24 = vpop.f32.mrf.mxu0 }
 0x642   : > { %v2330_v25 = vmul.f32 -1.442695, %v2027_v22  ;;  %v1968_v21 = vmax.f32 %v1963_v29, 0.0 }
 0x643   : > { %v1965_v26 = vpop.f32.mrf.mxu1  ;;  %v2029_v27 = vpop.f32.mrf.mxu0 }
 0x644   : > { %2613 = vpow2.f32 %v2330_v25 }
 0x645   : > { %v2514_v30 = vpop.f32.mrf.mxu1  ;;  %v2522_v31 = vpop.f32.mrf.mxu0 }
 0x651   : > { %v2614_v32 = vpop.eup %2613 }
 0x652   : > { %v2035_v33 = vadd.f32 1.0, %v2614_v32 }
 0x654   : > { %2615 = vrcp.f32 %v2035_v33 }
 0x661   : > { %v2616_v34 = vpop.eup %2615 }
 0x662   : > { %v2039_v35 = vsub.f32 1.0, %v2616_v34  ;;  %v2038_v36 = vmul.f32 %v2616_v34, %v1900_v15 }
 0x664   : > { %v2040_v37 = vmul.f32 %v2039_v35, %v1968_v21 }
 0x666   : > { %v2041_v38 = vadd.f32 %v2040_v37, %v2038_v36 }
 0x668   : > { %v2042_v39 = vadd.f32 %v2041_v38, %v2803_v3 }
 0x66a   : > { %2043 = vst.msk [vmem:[%s722_s24] sm:$0xff] %vm749_vm1, %v2042_v39 }
 0x66b PF: > { %s3132_s30 = sld [smem:[#allocation4_spill]] }
 0x66c   : > { %s3133_s29 = sld [smem:[#allocation2_spill]] }
 0x66d   : > { %s3135_s15 = sld [smem:[#allocation5_spill]] }
 0x66e   : > { %s3136_s16 = sld [smem:[#allocation6_spill]] }
 0x671   : > { %s24_s17 = sadd.s32 1, %s3132_s30   ;;  %s3134_s30 = sld [smem:[#allocation3_spill]] }
 0x672   : > { %p21_p8 = scmp.ge.s32.totalorder %s24_s17, 6  }
 0x674   :  { %23 = sbr.rel (!%p21_p8) target bundleno = 3 (0x3), region = 145 }

// kernel: self_attentive_lbl_bilm_v3.2
= control target key start
LH: loop header
LB: loop body
LE: loop exit
PB: predicated region body
PF: predicated region fallthrough
CT: control target
= control target key end

     0   :  { %s2740_s29 = smov 0   ;;  %s2742_s30 = smov 0   ;;  %s3093_s0 = inlined_call_operand.vmem [shape: f32[2,2,8,32], index: 0, kind: input, shape index: {}]   ;;  %s3094_s1 = inlined_call_operand.vmem [shape: bf16[2,32,32], index: 1, kind: input, shape index: {}]   ;;  %s3095_s2 = inlined_call_operand.vmem [shape: bf16[2,32,32], index: 2, kind: input, shape index: {}]   ;;  %s3096_s3 = inlined_call_operand.vmem [shape: bf16[2,32,32], index: 3, kind: input, shape index: {}]   ;;  %s3097_s4 = inlined_call_operand.vmem [shape: bf16[2,4,8,32], index: 4, kind: input, shape index: {}]   ;;  %s3098_s5 = inlined_call_operand.vmem [shape: f32[2,1,32], index: 5, kind: input, shape index: {}]   ;;  %s3099_s6 = inlined_call_operand.vmem [shape: f32[2,1,32], index: 6, kind: input, shape index: {}]   ;;  %s3100_s7 = inlined_call_operand.vmem [shape: f32[2,1,32], index: 7, kind: input, shape index: {}]   ;;  %s3101_s8 = inlined_call_operand.vmem [shape: f32[2,1,32], index: 8, kind: input, shape index: {}]   ;;  %s3102_s9 = inlined_call_operand.vmem [shape: bf16[2,4,4,8], index: 9, kind: input, shape index: {}]   ;;  %s3103_s10 = inlined_call_operand.vmem [shape: bf16[2,1,32,32], index: 10, kind: input, shape index: {}]   ;;  %s3104_s11 = inlined_call_operand.vmem [shape: f32[2,1,1,32], index: 11, kind: input, shape index: {}]   ;;  %s3105_s12 = inlined_call_operand.vmem [shape: bf16[2,1,32,32], index: 12, kind: input, shape index: {}]   ;;  %s3106_s13 = inlined_call_operand.vmem [shape: f32[2,1,1,32], index: 13, kind: input, shape index: {}]   ;;  %s3107_s14 = inlined_call_operand.vmem [shape: f32[2,2,8,32], index: 14, kind: output, shape index: {}]  }
   0x1   :  { %s2744_s15 = smov 0   ;;  %s2746_s16 = smov 0  }
   0x2   :  { %s2748_s17 = smov 0  }
   0x3 LB: > { %3111 = sst [smem:[#allocation2_spill]] %s2646_s15  ;;  %s33_s18 = sadd.s32 1, %s2646_s15  ;;  %s2654_s17 = sphi %s2748_s17, %s24_s17   ;;  %s2650_s16 = sphi %s2746_s16, %s3130_s16   ;;  %s2646_s15 = sphi %s2744_s15, %s3129_s15   ;;  %s2642_s30 = sphi %s2742_s30, %s3128_s30   ;;  %s2638_s29 = sphi %s2740_s29, %s3127_s29  }
   0x4   : > { %3112 = sst [smem:[#allocation3_spill]] %s2650_s16  ;;  %s36_s19 = sadd.s32 1, %s2650_s16 }
   0x5   : > { %3113 = sst [smem:[#allocation4_spill]] %s2654_s17  ;;  %p34_p0 = scmp.ge.s32.totalorder %s33_s18, 2 }
   0x6   : > { %p2271_p1 = scmp.ge.s32.totalorder %s2654_s17, 1  ;;  %p549_p2 = scmp.lt.s32.totalorder %s2654_s17, 5 }
   0x7   : > { %s3132_s18 = smov (%p34_p0, %s33_s18), 0  ;;  %s3134_s19 = smov (!%p34_p0, %s36_s19), %s2650_s16 }
   0x8   : > { %3114 = sst [smem:[#allocation5_spill]] %s3132_s18  ;;  %p550_p3 = pnand %p2271_p1, %p549_p2 }
   0x9   : > { %p38_p4 = scmp.ge.s32.totalorder %s3134_s19, 2  ;;  %p654_p5 = scmp.lt.s32.totalorder (!%p550_p3), %s2642_s30, 1 }
   0xa   : > { %553 = sbr.rel (%p550_p3) target bundleno = 1641 (0x669), region = 76  ;;  %p656_p6 = scmp.lt.s32.totalorder (!%p550_p3), %s2638_s29, 1 }
   0xb   : > { %s3136_s19 = smov (%p38_p4, %s3134_s19), 0  ;;  %s2658_s16 = smov (!%p550_p3), 104  }
   0xc   : > { %3115 = sst [smem:[#allocation6_spill]] %s3136_s19  ;;  %s2660_s19 = smov (!%p550_p3), 112  }
   0xd   : > { %p1151_p7 = scmp.eq.s32.totalorder (!%p550_p3), %s2642_s30, 0 }
   0xf   : > { %v2656_v0 = vmov 0.0   ;;  %vm2657_vm0 = vmmov 0   ;;  %s2777_s20 = scalar_select %p654_p5, %s2642_s30, 1  ;;  %vm749_vm1 = vcmask 261120   ;;  %vm966_vm2 = vcmask 64512  }
  0x10   : > { %2386 = vmatprep.subr.bf16.mxu0 %v2656_v0  ;;  %2390 = vmatprep.mubr.msk.bf16.mxu0 %vm2657_vm0, %v2656_v0  ;;  %s3138_s29 = smov (!%p656_p6, %s2638_s29), 1  ;;  %v2661_v29 = vmov 1   ;;  %v2662_v30 = vmov 0   ;;  %vm1512_vm3 = vcmask 1043456   ;;  %v2663_v61 = vmov 2  }
  0x11   : > { %2394 = vmatprep.subr.bf16.mxu1 %v2656_v0  ;;  %2398 = vmatprep.mubr.msk.bf16.mxu1 %vm2657_vm0, %v2656_v0  ;;  %s2783_s21 = sshll.u32 %s2777_s20, 4  ;;  %s2272_s22 = sshll.u32 %s2777_s20, 1  ;;  %v2664_v62 = vmov 3  }
  0x12   : > { %s666_s25 = scalar_lea.vmem %s3094_s1, %s2783_s21  ;;  %s2790_s26 = sadd.s32 %s2272_s22, %s3138_s29  ;;  %2572 = vset.pattern.permute.xlu1 %v2661_v29  ;;  %2571 = vset.pattern.permute.xlu0 %v2662_v30 }
  0x13   : > { %v2586_v1 = vld [vmem:[%s666_s25 + $0x8] sm:$0xff]   ;;  %s2273_s27 = sshll.u32 %s2790_s26, 3  ;;  %s671_s18 = scalar_lea.vmem %s3095_s2, %s2783_s21  ;;  %v2587_v2 = vld [vmem:[%s666_s25] sm:$0xff]  }
  0x14   : > { %s661_s17 = scalar_lea.vmem %s3093_s0, %s2273_s27  ;;  %2387 = vmatpush3.bf16.msra.mxu0 %v2586_v1  ;;  %v2588_v4 = vld [vmem:[%s671_s18 + $0x8] sm:$0xff]   ;;  %v2589_v6 = vld [vmem:[%s671_s18] sm:$0xff]   ;;  %s2336_s29 = sshll.u32 %s2777_s20, 3 }
  0x15   : > { %v724_v3 = vld [vmem:[%s661_s17] sm:$0xff]  ;;  %2388 = vmatprep.subr.bf16.mxu0 %v2656_v0  ;;  %2395 = vmatpush3.bf16.msra.mxu1 %v2588_v4  ;;  %s2816_s17 = scalar_lea.vmem %s3102_s9, %s2336_s29  ;;  %s676_s22 = scalar_lea.vmem %s3096_s3, %s2783_s21 }
  0x16   : > { %v725_v5 = vpack.c.bf16 %v724_v3, %v724_v3  ;;  %2396 = vmatprep.subr.bf16.mxu1 %v2656_v0  ;;  %v962_v7 = vld [vmem:[%s2816_s17] sm:$0x3]  ;;  %v2590_v9 = vld [vmem:[%s676_s22 + $0x8] sm:$0xff]   ;;  %v963_v11 = vld [vmem:[%s2816_s17 + $0x2] sm:$0x3]  ;;  %s684_s25 = scalar_lea.vmem %s3098_s5, %s2777_s20  ;;  %s687_s15 = scalar_lea.vmem %s3099_s6, %s2777_s20 }
  0x17   : > { %v971_v8 = vsel %vm966_vm2, %v962_v7, 0  ;;  %v2591_v10 = vld [vmem:[%s676_s22] sm:$0xff]   ;;  %v1017_v12 = vsel %vm966_vm2, %v963_v11, 0  ;;  %s2659_s18 = smov 120   ;;  %s690_s23 = scalar_lea.vmem %s3100_s7, %s2777_s20 }
  0x18   : > { %2389 = vmatpush3.bf16.msra.mxu0 %v2587_v2  ;;  %v2290_v13 = vld [vmem:[%s684_s25] ss:$0 sm:$0xff]  ;;  %v964_v18 = vld [vmem:[%s2816_s17 + $0x4] sm:$0x3]  ;;  %v965_v35 = vld [vmem:[%s2816_s17 + $0x6] sm:$0x3]  ;;  %s711_s22 = scalar_lea.vmem %s3105_s12, %s2783_s21  ;;  %s706_s17 = scalar_lea.vmem %s3104_s11, %s2777_s20 }
  0x19   : > { %2402 = vmatprep.subr.bf16.mxu0 %v2656_v0  ;;  %2397 = vmatpush3.bf16.msra.mxu1 %v2589_v6  ;;  %v2294_v17 = vld [vmem:[%s687_s15] ss:$0 sm:$0xff]  ;;  %v1063_v24 = vsel %vm966_vm2, %v964_v18, 0  ;;  %v1109_v39 = vsel %vm966_vm2, %v965_v35, 0  ;;  %s2907_s24 = scalar_select %p1151_p7, 1, 0 }
  0x1a   : > { %2410 = vmatprep.subr.bf16.mxu1 %v2656_v0  ;;  %v2298_v51 = vld [vmem:[%s690_s23] ss:$0 sm:$0xff] }
  0x1b   : > { %2391 = vmatmul.mubr.msk.bf16.vlgmr.msra.gmra.mxu0 %vm749_vm1, %v725_v5  ;;  %s2306_s30 = sshll.u32 %s2907_s24, 1  ;;  %s1165_s29 = smul.u32 3, %s2907_s24 }
  0x1c   : > { %2406 = vmatprep.mubr.msk.bf16.mxu0 %vm2657_vm0, %v2656_v0  ;;  %2399 = vmatmul.mubr.msk.bf16.vlgmr.msra.gmra.mxu1 %vm749_vm1, %v725_v5  ;;  %s2307_s25 = sadd.s32 4294967295, %s2306_s30  ;;  %s1166_s28 = ssub.s32 1, %s2306_s30 }
  0x1d   : > { %2412 = vmatprep.mubr.msk.bf16.mxu1 %vm2657_vm0, %v2656_v0  ;;  %2411 = vmatpush3.bf16.xpose.msra.mxu1 %v971_v8  ;;  %v1167_v35 = vstv %s1166_s28  ;;  %s703_s30 = scalar_lea.vmem %s3103_s10, %s2783_s21  ;;  %s693_s28 = scalar_lea.vmem %s3101_s8, %s2777_s20 }
  0x1e   : > { %2422 = vmatprep.subr.bf16.mxu1 %v2656_v0  ;;  %2403 = vmatpush3.bf16.msra.mxu0 %v2590_v9  ;;  %s722_s24 = scalar_lea.vmem %s3107_s14, %s2273_s27 }
  0x1f   : > { %2404 = vmatprep.subr.bf16.mxu0 %v2656_v0 }
  0x22   : > { %2405 = vmatpush3.bf16.msra.mxu0 %v2591_v10 }
  0x23   : > { %2416 = vmatprep.subr.bf16.mxu0 %v2656_v0 }
  0x25   : > { %2407 = vmatmul.mubr.msk.bf16.vlgmr.msra.gmra.mxu0 %vm749_vm1, %v725_v5 }
  0x26   : > { %2417 = vmatpush3.bf16.xpose.msra.mxu0 %v1017_v12  ;;  %2418 = vmatprep.mubr.msk.bf16.mxu0 %vm2657_vm0, %v2656_v0 }
  0x27   : > { %2428 = vmatprep.subr.bf16.mxu0 %v2656_v0 }
  0xdb   : > { %v787_v14 = vpop.f32.mrf.mxu0 }
  0xdc   : > { %v788_v15 = vadd.f32 %v2290_v13, %v787_v14  ;;  %v850_v20 = vpop.f32.mrf.mxu1 }
  0xdd   : > { %v2392_v16 = vpop.f32.mrf.mxu0  ;;  %v851_v23 = vadd.f32 %v2294_v17, %v850_v20 }
  0xde   : > { %v919_v19 = vmul.f32 0.35355338, %v788_v15  ;;  %v2400_v25 = vpop.f32.mrf.mxu1 }
  0xdf   : > { %v790_v21 = vpop.f32.mrf.mxu0  ;;  %v944_v40 = vpack.c.bf16 %v851_v23, %v851_v23 }
  0xe0   : > { %v930_v22 = vpack.c.bf16 %v919_v19, %v919_v19  ;;  %927 = vrot.lane.b32.xlu1 %v919_v19, %s2658_s16  ;;  %921 = vrot.lane.b32.xlu0 %v919_v19, %s2659_s18  ;;  %v853_v27 = vpop.f32.mrf.mxu1 }
  0xe1   : > { %v2393_v26 = vpop.f32.mrf.mxu0  ;;  %v1200_v45 = vsel %vm966_vm2, %v944_v40, 0 }
  0xe2   : > { %2413 = vmatmul.mubr.msk.bf16.vlgmr.msra.gmra.mxu1 %vm966_vm2, %v930_v22  ;;  %v2401_v28 = vpop.f32.mrf.mxu1 }
  0xe3   : > { %2423 = vmatpush3.bf16.xpose.msra.mxu1 %v1063_v24  ;;  %2424 = vmatprep.mubr.msk.bf16.mxu1 %vm2657_vm0, %v2656_v0 }
  0xe4   : > { %924 = vrot.lane.b32.xlu0 %v919_v19, %s2660_s19  ;;  %935 = vrot.lane.b32.xlu1 %v851_v23, %s2659_s18  ;;  %v1155_v19 = vlaneseq }
  0xe5   : > { %2434 = vmatprep.subr.bf16.mxu1 %v2656_v0  ;;  %v913_v31 = vpop.f32.mrf.mxu0 }
  0xe6   : > { %v2876_v54 = vadd.f32 %v2298_v51, %v913_v31  ;;  %v1156_v24 = vshrl.u32 %v1155_v19, 7  ;;  %v1158_v25 = vand.u32 127, %v1155_v19 }
  0xe7   : > { %v2408_v32 = vpop.f32.mrf.mxu0 }
  0xe8   : > { %938 = vrot.lane.b32.xlu0 %v851_v23, %s2660_s19  ;;  %941 = vrot.lane.b32.xlu1 %v851_v23, %s2658_s16  ;;  %v958_v56 = vpack.c.bf16 %v2876_v54, %v2876_v54  ;;  %v1159_v31 = vsub.s32 %v1156_v24, %v1158_v25  ;;  %v1160_v32 = vstv %s2307_s25 }
  0xe9   : > { %v916_v33 = vpop.f32.mrf.mxu0 }
  0xea   : > { %v1514_v57 = vsel %vm1512_vm3, %v958_v56, 0 }
  0xeb   : > { %v2409_v34 = vpop.f32.mrf.mxu0 }
  0xec   : > { %v1161_v34 = vmul.u32 %v1160_v32, %v1159_v31 }
  0xee   : > { %vm1162_vm4 = vcmp.ge.s32.totalorder %v1161_v34, 0  ;;  %vm1163_vm5 = vcmp.le.s32.totalorder %v1161_v34, 3 }
  0xef   : > { %vm2917_vm6 = vmand %vm1162_vm4, %vm1163_vm5 }
 0x152   : > { %v928_v36 = vpop.permute.xlu1 %927  ;;  %v922_v37 = vpop.permute.xlu0 %921 }
 0x153   : > { %v931_v38 = vpack.c.bf16 %v922_v37, %v922_v37  ;;  %v933_v47 = vpack.c.bf16 %v928_v36, %v928_v36  ;;  %v1168_v36 = vmul.u32 %v1167_v35, %v1161_v34  ;;  %v1169_v37 = vstv %s1165_s29 }
 0x155   : > { %2419 = vmatmul.mubr.msk.bf16.vlgmr.msra.gmra.mxu0 %vm966_vm2, %v931_v38 }
 0x156   : > { %2429 = vmatpush3.bf16.xpose.msra.mxu0 %v1109_v39  ;;  %v925_v41 = vpop.permute.xlu0 %924  ;;  %v936_v42 = vpop.permute.xlu1 %935  ;;  %2430 = vmatprep.mubr.msk.bf16.mxu0 %vm2657_vm0, %v2656_v0 }
 0x157   : > { %v932_v43 = vpack.c.bf16 %v925_v41, %v925_v41  ;;  %v945_v44 = vpack.c.bf16 %v936_v42, %v936_v42  ;;  %2440 = vmatprep.subr.bf16.mxu0 %v2656_v0 }
 0x159   : > { %2425 = vmatmul.mubr.msk.bf16.vlgmr.msra.gmra.mxu1 %vm966_vm2, %v932_v43  ;;  %v1243_v48 = vsel %vm966_vm2, %v945_v44, 0 }
 0x15a   : > { %2435 = vmatpush3.bf16.xpose.msra.mxu1 %v1200_v45  ;;  %v939_v46 = vpop.permute.xlu0 %938  ;;  %2436 = vmatprep.mubr.msk.bf16.mxu1 %vm2657_vm0, %v2656_v0  ;;  %v942_v50 = vpop.permute.xlu1 %941 }
 0x15b   : > { %v946_v49 = vpack.c.bf16 %v939_v46, %v939_v46  ;;  %2446 = vmatprep.subr.bf16.mxu1 %v2656_v0  ;;  %v947_v53 = vpack.c.bf16 %v942_v50, %v942_v50 }
 0x15d   : > { %2431 = vmatmul.mubr.msk.bf16.vlgmr.msra.gmra.mxu0 %vm966_vm2, %v933_v47  ;;  %v1286_v52 = vsel %vm966_vm2, %v946_v49, 0  ;;  %v1329_v55 = vsel %vm966_vm2, %v947_v53, 0 }
 0x15e   : > { %2441 = vmatpush3.bf16.xpose.msra.mxu0 %v1243_v48  ;;  %2442 = vmatprep.mubr.msk.bf16.mxu0 %vm2657_vm0, %v2656_v0 }
 0x15f   : > { %2452 = vmatprep.subr.bf16.mxu0 %v2656_v0 }
 0x161   : > { %2437 = vmatmul.mubr.msk.bf16.vlgmr.msra.gmra.mxu1 %vm966_vm2, %v930_v22 }
 0x162   : > { %2447 = vmatpush3.bf16.xpose.msra.mxu1 %v1286_v52  ;;  %2448 = vmatprep.mubr.msk.bf16.mxu1 %vm2657_vm0, %v2656_v0 }
 0x163   : > { %2458 = vmatprep.subr.bf16.mxu1 %v2656_v0 }
 0x165   : > { %2443 = vmatmul.mubr.msk.bf16.vlgmr.msra.gmra.mxu0 %vm966_vm2, %v931_v38  ;;  %v1170_v38 = vadd.s32 %v1169_v37, %v1168_v36 }
 0x166   : > { %2453 = vmatpush3.bf16.xpose.msra.mxu0 %v1329_v55  ;;  %2454 = vmatprep.mubr.msk.bf16.mxu0 %vm2657_vm0, %v2656_v0 }
 0x167   : > { %2464 = vmatprep.subr.bf16.mxu0 %v2656_v0  ;;  %vm1171_vm7 = vcmp.eq.s32.totalorder %v1170_v38, 0  ;;  %vm1371_vm9 = vcmp.eq.s32.totalorder %v1170_v38, 1  ;;  %vm1399_vm10 = vcmp.eq.s32.totalorder %v1170_v38, 2  ;;  %vm1427_vm13 = vcmp.eq.s32.totalorder %v1170_v38, 3 }
 0x168   : > { %vm2923_vm8 = vmand %vm2917_vm6, %vm1171_vm7 }
 0x169   : > { %2449 = vmatmul.mubr.msk.bf16.vlgmr.msra.gmra.mxu1 %vm966_vm2, %v932_v43  ;;  %vm2931_vm11 = vmand %vm2917_vm6, %vm1371_vm9 }
 0x16a   : > { %2459 = vmatpush3.bf16.msra.mxu1 %v1514_v57  ;;  %2460 = vmatprep.mubr.msk.bf16.mxu1 %vm2657_vm0, %v2656_v0  ;;  %vm2937_vm12 = vmand %vm2917_vm6, %vm1399_vm10 }
 0x16b   : > { %2470 = vmatprep.subr.bf16.mxu1 %v2656_v0  ;;  %vm2947_vm14 = vmand %vm2917_vm6, %vm1427_vm13 }
 0x16d   : > { %2455 = vmatmul.mubr.msk.bf16.vlgmr.msra.gmra.mxu0 %vm966_vm2, %v933_v47 }
 0x16e   : > { %2466 = vmatprep.mubr.msk.bf16.mxu0 %vm2657_vm0, %v2656_v0 }
 0x1a2   : > { %v1007_v58 = vpop.f32.mrf.mxu1 }
 0x1a3   : > { %1376 = vperm.xlu1 %2572, %v1007_v58   ;;  %1177 = vperm.xlu0 %2571, %v1007_v58  }
 0x1a4   : > { %v2414_v59 = vpop.f32.mrf.mxu1 }
 0x1a6   : > { %v1010_v60 = vpop.f32.mrf.mxu1 }
 0x1a7   : > { %2573 = vset.pattern.permute.xlu1 %v2663_v61  ;;  %2574 = vset.pattern.permute.xlu0 %v2664_v62 }
 0x1a8   : > { %1404 = vperm.xlu1 %2573, %v1007_v58   ;;  %1432 = vperm.xlu0 %2574, %v1007_v58   ;;  %v2415_v63 = vpop.f32.mrf.mxu1 }
 0x1ac   : > { %2575 = vset.pattern.permute.xlu1 %v2662_v30  ;;  %2576 = vset.pattern.permute.xlu0 %v2661_v29 }
 0x215   : > { %v1053_v1 = vpop.f32.mrf.mxu0 }
 0x216   : > { %1380 = vperm.xlu0 %2576, %v1053_v1   ;;  %1182 = vperm.xlu1 %2575, %v1053_v1  }
 0x217   : > { %v2420_v2 = vpop.f32.mrf.mxu0 }
 0x219   : > { %v1056_v3 = vpop.f32.mrf.mxu0  ;;  %v1099_v4 = vpop.f32.mrf.mxu1 }
 0x21a   : > { %2581 = vset.pattern.permute.xlu0 %v2663_v61  ;;  %2577 = vset.pattern.permute.xlu1 %v2663_v61 }
 0x21b   : > { %v2426_v5 = vpop.f32.mrf.mxu1  ;;  %1412 = vperm.xlu0 %2581, %v1099_v4   ;;  %1408 = vperm.xlu1 %2577, %v1053_v1   ;;  %v2421_v6 = vpop.f32.mrf.mxu0 }
 0x21d   : > { %v1102_v7 = vpop.f32.mrf.mxu1  ;;  %v1145_v8 = vpop.f32.mrf.mxu0 }
 0x21e   : > { %v1377_v40 = vpop.permute.xlu1 %1376  ;;  %v1178_v42 = vpop.permute.xlu0 %1177 }
 0x21f   : > { %v2427_v9 = vpop.f32.mrf.mxu1  ;;  %2582 = vset.pattern.permute.xlu0 %v2662_v30  ;;  %2578 = vset.pattern.permute.xlu1 %v2662_v30  ;;  %v2432_v10 = vpop.f32.mrf.mxu0  ;;  %v1195_v43 = vsel %vm2923_vm8, %v1178_v42, 0.0  ;;  %v1391_v48 = vsel %vm2931_vm11, %v1377_v40, 0.0 }
 0x220   : > { %1187 = vperm.xlu1 %2578, %v1099_v4   ;;  %1192 = vperm.xlu0 %2582, %v1145_v8  }
 0x221   : > { %v1148_v11 = vpop.f32.mrf.mxu0  ;;  %v1236_v12 = vpop.f32.mrf.mxu1 }
 0x222   : > { %v1237_v45 = vadd.f32 %v1236_v12, %v1195_v43 }
 0x223   : > { %v2433_v13 = vpop.f32.mrf.mxu0  ;;  %v2438_v14 = vpop.f32.mrf.mxu1 }
 0x224   : > { %2579 = vset.pattern.permute.xlu1 %v2664_v62  ;;  %2585 = vset.pattern.permute.xlu0 %v2664_v62  ;;  %v1405_v47 = vpop.permute.xlu1 %1404  ;;  %v1395_v49 = vadd.f32 %v1391_v48, %v1237_v45  ;;  %v1433_v53 = vpop.permute.xlu0 %1432 }
 0x225   : > { %1436 = vperm.xlu1 %2579, %v1053_v1   ;;  %1444 = vperm.xlu0 %2585, %v1145_v8   ;;  %v1239_v15 = vpop.f32.mrf.mxu1  ;;  %v2905_v16 = vpop.f32.mrf.mxu0  ;;  %v1419_v50 = vsel %vm2937_vm12, %v1405_v47, 0.0  ;;  %v1447_v55 = vsel %vm2947_vm14, %v1433_v53, 0.0 }
 0x226   : > { %v1423_v51 = vadd.f32 %v1419_v50, %v1395_v49 }
 0x227   : > { %v2439_v17 = vpop.f32.mrf.mxu1  ;;  %v2444_v18 = vpop.f32.mrf.mxu0 }
 0x228   : > { %v1451_v56 = vadd.f32 %v1447_v55, %v1423_v51 }
 0x229   : > { %2580 = vset.pattern.permute.xlu1 %v2661_v29  ;;  %v2910_v20 = vpop.f32.mrf.mxu1  ;;  %v1282_v21 = vpop.f32.mrf.mxu0 }
 0x22a   : > { %1384 = vperm.xlu1 %2580, %v1099_v4   ;;  %v1457_v57 = vsel %vm2917_vm6, %v1451_v56, -1e+09 }
 0x22b   : > { %v2445_v22 = vpop.f32.mrf.mxu0  ;;  %v2450_v23 = vpop.f32.mrf.mxu1  ;;  %v1461_v58 = vsel %vm966_vm2, %v1457_v57, -inf }
 0x22d   : > { %v1325_v26 = vpop.f32.mrf.mxu1  ;;  %v2913_v27 = vpop.f32.mrf.mxu0 }
 0x22e   : > { %1388 = vperm.xlu1 %2580, %v1145_v8  }
 0x22f   : > { %v2451_v28 = vpop.f32.mrf.mxu1  ;;  %v2456_v30 = vpop.f32.mrf.mxu0 }
 0x231   : > { %v1368_v29 = vpop.f32.mrf.mxu0 }
 0x232   : > { %2583 = vset.pattern.permute.xlu1 %v2663_v61 }
 0x233   : > { %1416 = vperm.xlu1 %2583, %v1145_v8   ;;  %v2457_v33 = vpop.f32.mrf.mxu0 }
 0x237   : > { %2584 = vset.pattern.permute.xlu1 %v2664_v62 }
 0x238   : > { %1440 = vperm.xlu1 %2584, %v1099_v4  }
 0x25c   : > { %1462 = vmax.xlane.f32.xlu1 %v1461_v58 }
 0x291   : > { %v1183_v59 = vpop.permute.xlu1 %1182  ;;  %v1381_v62 = vpop.permute.xlu0 %1380 }
 0x292   : > { %v1196_v60 = vsel %vm2923_vm8, %v1183_v59, 0.0  ;;  %v1392_v1 = vsel %vm2931_vm11, %v1381_v62, 0.0 }
 0x293   : > { %v1280_v63 = vadd.f32 %v2905_v16, %v1196_v60 }
 0x295   : > { %v1396_v3 = vadd.f32 %v1392_v1, %v1280_v63 }
 0x296   : > { %v1409_v61 = vpop.permute.xlu1 %1408  ;;  %v1413_v5 = vpop.permute.xlu0 %1412 }
 0x297   : > { %v1420_v4 = vsel %vm2937_vm12, %v1409_v61, 0.0  ;;  %v1421_v31 = vsel %vm2937_vm12, %v1413_v5, 0.0 }
 0x298   : > { %v1424_v6 = vadd.f32 %v1420_v4, %v1396_v3 }
 0x29b   : > { %v1188_v2 = vpop.permute.xlu1 %1187  ;;  %v1193_v13 = vpop.permute.xlu0 %1192 }
 0x29c   : > { %v1198_v14 = vsel %vm2923_vm8, %v1193_v13, 0.0  ;;  %v1197_v16 = vsel %vm2923_vm8, %v1188_v2, 0.0 }
 0x29d   : > { %v1366_v18 = vadd.f32 %v2913_v27, %v1198_v14  ;;  %v1323_v21 = vadd.f32 %v2910_v20, %v1197_v16 }
 0x2a0   : > { %v1437_v7 = vpop.permute.xlu1 %1436  ;;  %v1445_v22 = vpop.permute.xlu0 %1444 }
 0x2a1   : > { %v1448_v8 = vsel %vm2947_vm14, %v1437_v7, 0.0  ;;  %v1450_v30 = vsel %vm2947_vm14, %v1445_v22, 0.0 }
 0x2a2   : > { %v1452_v9 = vadd.f32 %v1448_v8, %v1424_v6 }
 0x2a4   : > { %v1458_v10 = vsel %vm2917_vm6, %v1452_v9, -1e+09 }
 0x2a5   : > { %v1385_v11 = vpop.permute.xlu1 %1384  ;;  %v1464_v12 = vsel %vm966_vm2, %v1458_v10, -inf }
 0x2a6   : > { %1465 = vmax.xlane.f32.xlu0 %v1464_v12  ;;  %v1393_v19 = vsel %vm2931_vm11, %v1385_v11, 0.0 }
 0x2a7   : > { %v1397_v25 = vadd.f32 %v1393_v19, %v1323_v21 }
 0x2a9   : > { %v1389_v15 = vpop.permute.xlu1 %1388  ;;  %v1425_v32 = vadd.f32 %v1421_v31, %v1397_v25 }
 0x2aa   : > { %v1394_v17 = vsel %vm2931_vm11, %v1389_v15, 0.0 }
 0x2ab   : > { %v1398_v23 = vadd.f32 %v1394_v17, %v1366_v18 }
 0x2ae   : > { %v1417_v24 = vpop.permute.xlu1 %1416 }
 0x2af   : > { %v1422_v26 = vsel %vm2937_vm12, %v1417_v24, 0.0 }
 0x2b0   : > { %v1426_v28 = vadd.f32 %v1422_v26, %v1398_v23 }
 0x2b2   : > { %v1454_v27 = vadd.f32 %v1450_v30, %v1426_v28 }
 0x2b3   : > { %v1441_v29 = vpop.permute.xlu1 %1440 }
 0x2b4   : > { %v1449_v20 = vsel %vm2947_vm14, %v1441_v29, 0.0  ;;  %v1460_v33 = vsel %vm2917_vm6, %v1454_v27, -1e+09 }
 0x2b5   : > { %v1453_v34 = vadd.f32 %v1449_v20, %v1425_v32  ;;  %v1470_v35 = vsel %vm966_vm2, %v1460_v33, -inf }
 0x2b6   : > { %1471 = vmax.xlane.f32.xlu0 %v1470_v35 }
 0x2b7   : > { %v1459_v36 = vsel %vm2917_vm6, %v1453_v34, -1e+09 }
 0x2b8   : > { %v1467_v37 = vsel %vm966_vm2, %v1459_v36, -inf }
 0x2b9   : > { %1468 = vmax.xlane.f32.xlu1 %v1467_v37 }
 0x2ca   : > { %949 = vrot.lane.b32.xlu1 %v2876_v54, %s2659_s18  ;;  %s681_s18 = scalar_lea.vmem %s3097_s4, %s2783_s21 }
 0x2cb   : > { %v1698_v18 = vld [vmem:[%s681_s18] sm:$0xf]  ;;  %v1699_v23 = vld [vmem:[%s681_s18 + $0x4] sm:$0xf]  ;;  %v1700_v25 = vld [vmem:[%s681_s18 + $0x8] sm:$0xf] }
 0x2cc   : > { %v1706_v22 = vsel %vm1512_vm3, %v1698_v18, 0  ;;  %v1752_v24 = vsel %vm1512_vm3, %v1699_v23, 0  ;;  %v1798_v30 = vsel %vm1512_vm3, %v1700_v25, 0  ;;  %v1701_v29 = vld [vmem:[%s681_s18 + $0xc] sm:$0xf] }
 0x2cd   : > { %v1844_v34 = vsel %vm1512_vm3, %v1701_v29, 0 }
 0x2e5   : > { %v1463_v38 = vpop.xlane.xlu1 %1462 }
 0x2e6   : > { %v1473_v40 = vsub.f32 %v1457_v57, %v1463_v38 }
 0x2e8   : > { %v1477_v41 = vmul.f32 1.442695, %v1473_v40 }
 0x2ea   : > { %2596 = vpow2.f32 %v1477_v41 }
 0x2f7   : > { %v2597_v42 = vpop.eup %2596 }
 0x2f8   : > { %v1485_v43 = vsel %vm966_vm2, %v2597_v42, 0.0 }
 0x2f9   : > { %1486 = vadd.xlane.f32.xlu1 %v1485_v43 }
 0x32f   : > { %v1466_v44 = vpop.xlane.xlu0 %1465 }
 0x330   : > { %v1474_v45 = vsub.f32 %v1458_v10, %v1466_v44 }
 0x332   : > { %v1479_v46 = vmul.f32 1.442695, %v1474_v45 }
 0x334   : > { %2598 = vpow2.f32 %v1479_v46 }
 0x33f   : > { %v1472_v39 = vpop.xlane.xlu0 %1471 }
 0x340   : > { %v1476_v47 = vsub.f32 %v1460_v33, %v1472_v39 }
 0x341   : > { %v2599_v48 = vpop.eup %2598 }
 0x342   : > { %v1483_v49 = vmul.f32 1.442695, %v1476_v47  ;;  %v1469_v50 = vpop.xlane.xlu1 %1468  ;;  %v1488_v51 = vsel %vm966_vm2, %v2599_v48, 0.0 }
 0x343   : > { %v1475_v52 = vsub.f32 %v1459_v36, %v1469_v50  ;;  %1489 = vadd.xlane.f32.xlu0 %v1488_v51  ;;  %v2594_v50 = vld [vmem:[%s711_s22] sm:$0xff]  }
 0x344   : > { %2600 = vpow2.f32 %v1483_v49  ;;  %v2593_v49 = vld [vmem:[%s703_s30 + $0x8] sm:$0xff]   ;;  %v2595_v51 = vld [vmem:[%s703_s30] sm:$0xff]  }
 0x345   : > { %v1481_v53 = vmul.f32 1.442695, %v1475_v52 }
 0x346   : > { %v950_v55 = vpop.permute.xlu1 %949 }
 0x347   : > { %2602 = vpow2.f32 %v1481_v53  ;;  %v959_v56 = vpack.c.bf16 %v950_v55, %v950_v55 }
 0x349   : > { %v1560_v57 = vsel %vm1512_vm3, %v959_v56, 0 }
 0x34a   : > { %2465 = vmatpush3.bf16.msra.mxu0 %v1560_v57 }
 0x34b   : > { %2476 = vmatprep.subr.bf16.mxu0 %v2656_v0 }
 0x351   : > { %v2601_v58 = vpop.eup %2600 }
 0x352   : > { %v1494_v59 = vsel %vm966_vm2, %v2601_v58, 0.0 }
 0x353   : > { %1495 = vadd.xlane.f32.xlu0 %v1494_v59 }
 0x354   : > { %v2603_v60 = vpop.eup %2602 }
 0x355   : > { %v1491_v61 = vsel %vm966_vm2, %v2603_v60, 0.0 }
 0x356   : > { %1492 = vadd.xlane.f32.xlu1 %v1491_v61 }
 0x367   : > { %955 = vrot.lane.b32.xlu1 %v2876_v54, %s2658_s16  ;;  %s714_s16 = scalar_lea.vmem %s3106_s13, %s2777_s20 }
 0x369   : > { %952 = vrot.lane.b32.xlu0 %v2876_v54, %s2660_s19 }
 0x382   : > { %v1487_v62 = vpop.xlane.xlu1 %1486 }
 0x383   : > { %2604 = vrcp.f32 %v1487_v62 }
 0x390   : > { %v2605_v63 = vpop.eup %2604 }
 0x391   : > { %v1501_v1 = vmul.f32 %v2605_v63, %v2597_v42 }
 0x393   : > { %v1505_v2 = vpack.c.bf16 %v1501_v1, %v1501_v1 }
 0x395   : > { %2461 = vmatmul.mubr.msk.bf16.vlgmr.msra.gmra.mxu1 %vm966_vm2, %v1505_v2 }
 0x396   : > { %2472 = vmatprep.mubr.msk.bf16.mxu1 %vm2657_vm0, %v2656_v0 }
 0x3cc   : > { %v1490_v3 = vpop.xlane.xlu0 %1489 }
 0x3cd   : > { %2606 = vrcp.f32 %v1490_v3 }
 0x3da   : > { %v2607_v4 = vpop.eup %2606 }
 0x3db   : > { %v1502_v5 = vmul.f32 %v2607_v4, %v2599_v48  ;;  %v2592_v48 = vld [vmem:[%s711_s22 + $0x8] sm:$0xff]  }
 0x3dc   : > { %v1496_v6 = vpop.xlane.xlu0 %1495 }
 0x3dd   : > { %2608 = vrcp.f32 %v1496_v6  ;;  %v1506_v7 = vpack.c.bf16 %v1502_v5, %v1502_v5 }
 0x3df   : > { %v1493_v8 = vpop.xlane.xlu1 %1492  ;;  %2467 = vmatmul.mubr.msk.bf16.vlgmr.msra.gmra.mxu0 %vm966_vm2, %v1506_v7 }
 0x3e0   : > { %2610 = vrcp.f32 %v1493_v8  ;;  %v953_v54 = vpop.permute.xlu0 %952  ;;  %2478 = vmatprep.mubr.msk.bf16.mxu0 %vm2657_vm0, %v2656_v0  ;;  %v2320_v8 = vld [vmem:[%s693_s28] ss:$0 sm:$0xff] }
 0x3e1   : > { %v960_v9 = vpack.c.bf16 %v953_v54, %v953_v54 }
 0x3e3   : > { %v1606_v10 = vsel %vm1512_vm3, %v960_v9, 0  ;;  %v956_v11 = vpop.permute.xlu1 %955 }
 0x3e4   : > { %v961_v12 = vpack.c.bf16 %v956_v11, %v956_v11  ;;  %2471 = vmatpush3.bf16.msra.mxu1 %v1606_v10 }
 0x3e5   : > { %2482 = vmatprep.subr.bf16.mxu1 %v2656_v0 }
 0x3e6   : > { %v1652_v13 = vsel %vm1512_vm3, %v961_v12, 0 }
 0x3e7   : > { %2477 = vmatpush3.bf16.msra.mxu0 %v1652_v13 }
 0x3e8   : > { %2488 = vmatprep.subr.bf16.mxu0 %v2656_v0 }
 0x3ea   : > { %v2609_v14 = vpop.eup %2608 }
 0x3eb   : > { %v1504_v15 = vmul.f32 %v2609_v14, %v2601_v58  ;;  %v2325_v14 = vld [vmem:[%s714_s16] ss:$0 sm:$0xff] }
 0x3ed   : > { %v2611_v16 = vpop.eup %2610  ;;  %v1508_v17 = vpack.c.bf16 %v1504_v15, %v1504_v15 }
 0x3ee   : > { %v1503_v19 = vmul.f32 %v2611_v16, %v2603_v60 }
 0x3ef   : > { %2479 = vmatmul.mubr.msk.bf16.vlgmr.msra.gmra.mxu0 %vm966_vm2, %v1508_v17 }
 0x3f0   : > { %v1507_v21 = vpack.c.bf16 %v1503_v19, %v1503_v19  ;;  %2490 = vmatprep.mubr.msk.bf16.mxu0 %vm2657_vm0, %v2656_v0  ;;  %2489 = vmatpush3.bf16.msra.mxu0 %v1752_v24 }
 0x3f1   : > { %2500 = vmatprep.subr.bf16.mxu0 %v2656_v0 }
 0x3f2   : > { %2473 = vmatmul.mubr.msk.bf16.vlgmr.msra.gmra.mxu1 %vm966_vm2, %v1507_v21 }
 0x3f3   : > { %2483 = vmatpush3.bf16.msra.mxu1 %v1706_v22  ;;  %2484 = vmatprep.mubr.msk.bf16.mxu1 %vm2657_vm0, %v2656_v0 }
 0x3f4   : > { %2494 = vmatprep.subr.bf16.mxu1 %v2656_v0 }
 0x455   : > { %v1550_v26 = vpop.f32.mrf.mxu1 }
 0x456   : > { %v1694_v28 = vpack.c.bf16 %v1550_v26, %v1550_v26 }
 0x457   : > { %v2462_v31 = vpop.f32.mrf.mxu1 }
 0x458   : > { %2485 = vmatmul.mubr.msk.bf16.vlgmr.msra.gmra.mxu1 %vm966_vm2, %v1694_v28 }
 0x459   : > { %v1553_v27 = vpop.f32.mrf.mxu1  ;;  %2495 = vmatpush3.bf16.msra.mxu1 %v1798_v30  ;;  %2496 = vmatprep.mubr.msk.bf16.mxu1 %vm2657_vm0, %v2656_v0  ;;  %v2321_v30 = vld [vmem:[%s706_s17] ss:$0 sm:$0xff] }
 0x45a   : > { %2506 = vmatprep.subr.bf16.mxu1 %v2656_v0 }
 0x45b   : > { %v2463_v32 = vpop.f32.mrf.mxu1 }
 0x49f   : > { %v1596_v20 = vpop.f32.mrf.mxu0 }
 0x4a0   : > { %v1695_v33 = vpack.c.bf16 %v1596_v20, %v1596_v20 }
 0x4a1   : > { %v2468_v35 = vpop.f32.mrf.mxu0 }
 0x4a2   : > { %2491 = vmatmul.mubr.msk.bf16.vlgmr.msra.gmra.mxu0 %vm966_vm2, %v1695_v33 }
 0x4a3   : > { %v1599_v36 = vpop.f32.mrf.mxu0  ;;  %2501 = vmatpush3.bf16.msra.mxu0 %v1844_v34  ;;  %2502 = vmatprep.mubr.msk.bf16.mxu0 %vm2657_vm0, %v2656_v0 }
 0x4a4   : > { %2514 = vmatprep.subr.bf16.mxu0 %v2656_v0 }
 0x4a5   : > { %v2469_v37 = vpop.f32.mrf.mxu0 }
 0x4af   : > { %v1688_v38 = vpop.f32.mrf.mxu0 }
 0x4b0   : > { %v1697_v40 = vpack.c.bf16 %v1688_v38, %v1688_v38 }
 0x4b1   : > { %v2480_v41 = vpop.f32.mrf.mxu0 }
 0x4b2   : > { %v1642_v42 = vpop.f32.mrf.mxu1  ;;  %2503 = vmatmul.mubr.msk.bf16.vlgmr.msra.gmra.mxu0 %vm966_vm2, %v1697_v40 }
 0x4b3   : > { %v1696_v43 = vpack.c.bf16 %v1642_v42, %v1642_v42  ;;  %v1691_v44 = vpop.f32.mrf.mxu0  ;;  %2518 = vmatprep.mubr.msk.bf16.mxu0 %vm2657_vm0, %v2656_v0  ;;  %2515 = vmatpush3.bf16.msra.mxu0 %v2592_v48 }
 0x4b4   : > { %v2474_v45 = vpop.f32.mrf.mxu1  ;;  %2516 = vmatprep.subr.bf16.mxu0 %v2656_v0 }
 0x4b5   : > { %v2481_v46 = vpop.f32.mrf.mxu0  ;;  %2497 = vmatmul.mubr.msk.bf16.vlgmr.msra.gmra.mxu1 %vm966_vm2, %v1696_v43 }
 0x4b6   : > { %v1645_v39 = vpop.f32.mrf.mxu1  ;;  %2510 = vmatprep.mubr.msk.bf16.mxu1 %vm2657_vm0, %v2656_v0  ;;  %2507 = vmatpush3.bf16.msra.mxu1 %v2593_v49 }
 0x4b7   : > { %2508 = vmatprep.subr.bf16.mxu1 %v2656_v0  ;;  %2517 = vmatpush3.bf16.msra.mxu0 %v2594_v50 }
 0x4b8   : > { %v2475_v47 = vpop.f32.mrf.mxu1 }
 0x4ba   : > { %2509 = vmatpush3.bf16.msra.mxu1 %v2595_v51 }
 0x518   : > { %v1742_v52 = vpop.f32.mrf.mxu1 }
 0x519   : > { %v1886_v63 = vsel %vm749_vm1, %v1742_v52, 0.0 }
 0x51a   : > { %v2486_v53 = vpop.f32.mrf.mxu1 }
 0x51c   : > { %v1745_v55 = vpop.f32.mrf.mxu1 }
 0x51e   : > { %v2487_v56 = vpop.f32.mrf.mxu1 }
 0x562   : > { %v1788_v57 = vpop.f32.mrf.mxu0 }
 0x563   : > { %v1887_v61 = vsel %vm749_vm1, %v1788_v57, 0.0 }
 0x564   : > { %v2492_v58 = vpop.f32.mrf.mxu0  ;;  %v1888_v0 = vadd.f32 %v1887_v61, %v1886_v63 }
 0x566   : > { %v1791_v59 = vpop.f32.mrf.mxu0 }
 0x568   : > { %v2493_v60 = vpop.f32.mrf.mxu0 }
 0x572   : > { %v1880_v62 = vpop.f32.mrf.mxu0 }
 0x573   : > { %v1891_v7 = vsel %vm749_vm1, %v1880_v62, 0.0 }
 0x574   : > { %v2504_v1 = vpop.f32.mrf.mxu0 }
 0x575   : > { %v1834_v2 = vpop.f32.mrf.mxu1 }
 0x576   : > { %v1889_v3 = vsel %vm749_vm1, %v1834_v2, 0.0  ;;  %v1883_v4 = vpop.f32.mrf.mxu0 }
 0x577   : > { %v1890_v5 = vadd.f32 %v1889_v3, %v1888_v0  ;;  %v2498_v6 = vpop.f32.mrf.mxu1 }
 0x578   : > { %v2505_v54 = vpop.f32.mrf.mxu0 }
 0x579   : > { %v1892_v9 = vadd.f32 %v1891_v7, %v1890_v5  ;;  %v1837_v10 = vpop.f32.mrf.mxu1 }
 0x57b   : > { %v1900_v11 = vadd.f32 %v2320_v8, %v1892_v9  ;;  %v2499_v12 = vpop.f32.mrf.mxu1 }
 0x57d   : > { %v1901_v13 = vpack.c.bf16 %v1900_v11, %v1900_v11 }
 0x57f   : > { %2511 = vmatmul.mubr.msk.bf16.vlgmr.msra.gmra.mxu1 %vm749_vm1, %v1901_v13  ;;  %2519 = vmatmul.mubr.msk.bf16.vlgmr.msra.gmra.mxu0 %vm749_vm1, %v1901_v13 }
 0x63f   : > { %v1962_v15 = vpop.f32.mrf.mxu1  ;;  %v2026_v16 = vpop.f32.mrf.mxu0 }
 0x640   : > { %v2027_v17 = vadd.f32 %v2325_v14, %v2026_v16  ;;  %v1963_v31 = vadd.f32 %v2321_v30, %v1962_v15 }
 0x641   : > { %v2512_v18 = vpop.f32.mrf.mxu1  ;;  %v2520_v19 = vpop.f32.mrf.mxu0 }
 0x642   : > { %v2329_v21 = vmul.f32 -1.442695, %v2027_v17  ;;  %v1968_v32 = vmax.f32 %v1963_v31, 0.0 }
 0x643   : > { %v1965_v22 = vpop.f32.mrf.mxu1  ;;  %v2029_v23 = vpop.f32.mrf.mxu0 }
 0x644   : > { %2612 = vpow2.f32 %v2329_v21 }
 0x645   : > { %v2513_v24 = vpop.f32.mrf.mxu1  ;;  %v2521_v25 = vpop.f32.mrf.mxu0 }
 0x651   : > { %v2613_v26 = vpop.eup %2612 }
 0x652   : > { %v2035_v28 = vadd.f32 1.0, %v2613_v26 }
 0x654   : > { %2614 = vrcp.f32 %v2035_v28 }
 0x661   : > { %v2615_v27 = vpop.eup %2614 }
 0x662   : > { %v2039_v29 = vsub.f32 1.0, %v2615_v27  ;;  %v2038_v20 = vmul.f32 %v2615_v27, %v1900_v11 }
 0x664   : > { %v2040_v33 = vmul.f32 %v2039_v29, %v1968_v32 }
 0x666   : > { %v2041_v34 = vadd.f32 %v2040_v33, %v2038_v20 }
 0x668   : > { %2042 = vst.msk [vmem:[%s722_s24] sm:$0xff] %vm749_vm1, %v2041_v34 }
 0x669 PF: > { %s3126_s30 = sld [smem:[#allocation4_spill]] }
 0x66a   : > { %s3127_s29 = sld [smem:[#allocation2_spill]] }
 0x66b   : > { %s3129_s15 = sld [smem:[#allocation5_spill]] }
 0x66c   : > { %s3130_s16 = sld [smem:[#allocation6_spill]] }
 0x66f   : > { %s24_s17 = sadd.s32 1, %s3126_s30   ;;  %s3128_s30 = sld [smem:[#allocation3_spill]] }
 0x670   : > { %p21_p8 = scmp.ge.s32.totalorder %s24_s17, 6  }
 0x672   :  { %23 = sbr.rel (!%p21_p8) target bundleno = 3 (0x3), region = 145 }

</bundles_post_ra>
